<compile_context>
chip_gen: v7x
topology: tpu7x:2x2x1
jax: 0.10.0
libtpu: 0.0.40
codegen_flags: <defaults>
</compile_context>

<pallas_src>
import jax
import jax.numpy as jnp
from jax import lax
from jax.experimental import pallas as pl
from jax.experimental.pallas import tpu as pltpu


# ----------------------------------------------------------------------------
# Fused kernel: conv0(im2col) + bn1/relu + 1x1 + bn2/relu + dw3x3 + pw1x1
# ----------------------------------------------------------------------------
def _fused_dense_kernel(xcol_ref, w0_ref, s1_ref, t1_ref, w1_ref, s2_ref,
                        t2_ref, dw_ref, pw_ref, x2_ref, nf1_ref, pad_ref):
    # xcol_ref: (1, H+2, W, 27)  im2col patches, resident per image
    # w0_ref:   (27, 64)         conv0 weight (K=27 im2col form)
    # s1/t1:    (1, 64)          folded BN1 scale / bias
    # w1_ref:   (64, 128)        1x1 conv weight
    # s2/t2:    (1, 128)         folded BN2 scale / bias
    # dw_ref:   (3, 3, 128)      depthwise 3x3 weight
    # pw_ref:   (128, 32)        pointwise 1x1 weight
    # x2_ref:   (1, TR, W, 192)  output, kernel channel order [b1 | x0]
    # nf1_ref:  (1, TR, W, 32)   output
    # pad_ref:  (TR+2, W+16, 128) VMEM scratch (zero-bordered b1 for depthwise)
    TR = x2_ref.shape[1]
    W = x2_ref.shape[2]
    H = xcol_ref.shape[1] - 2
    C0 = w0_ref.shape[1]
    C1 = w1_ref.shape[1]
    Cg = pw_ref.shape[1]
    LP = 8                                   # aligned halo stripe width

    r = pl.program_id(1)
    row0 = pl.multiple_of(r * TR, TR)

    # --- conv0: single K=27 im2col matmul over TR+2 rows (1-row halo) -------
    xblk = xcol_ref[0, pl.ds(row0, TR + 2)]               # (TR+2, W, 27)
    patches = xblk.reshape((TR + 2) * W, xblk.shape[-1])
    x0e = jnp.dot(patches, w0_ref[...],
                  preferred_element_type=jnp.float32)     # (M, 64)

    # --- bn1 + relu + 1x1 conv + bn2 + relu (one MXU matmul) ----------------
    h = jnp.maximum(x0e * s1_ref[...] + t1_ref[...], 0.0)
    b1e = jnp.dot(h, w1_ref[...], preferred_element_type=jnp.float32)
    b1e = jnp.maximum(b1e * s2_ref[...] + t2_ref[...], 0.0)
    b1e = b1e.reshape(TR + 2, W, C1)

    # Halo rows outside the image must be ZERO for the depthwise SAME padding
    # (not "b1 evaluated outside the image").
    row_ids = row0 - 1 + lax.broadcasted_iota(jnp.int32, (TR + 2, 1, 1), 0)
    b1e = jnp.where(jnp.logical_and(row_ids >= 0, row_ids < H), b1e, 0.0)

    # --- x2 output: lane-dense 192-wide store of the interior TR rows -------
    # Kernel channel order is [b1 (0:128) | x0 (128:192)] so both stores are
    # 128-lane aligned; the wrapper restores cat([x0, b1]) during the NCHW
    # transpose it has to do anyway.
    x0_int = x0e.reshape(TR + 2, W, C0)[1:TR + 1]
    b1_int = b1e[1:TR + 1]
    x2_ref[0, :, :, 0:C1] = b1_int.astype(x2_ref.dtype)
    x2_ref[0, :, :, C1:C1 + C0] = x0_int.astype(x2_ref.dtype)

    # --- depthwise 3x3: zero-bordered VMEM scratch (no HBM pad round-trip) --
    zstripe = jnp.zeros((TR + 2, LP, C1), jnp.float32)
    pad_ref[:, 0:LP, :] = zstripe                         # left zero stripe
    pad_ref[:, LP + W:LP + W + LP, :] = zstripe           # right zero stripe
    pad_ref[:, LP:LP + W, :] = b1e                        # aligned interior

    acc = jnp.zeros((TR, W, C1), jnp.float32)
    for ky in range(3):
        for kx in range(3):
            tap = pad_ref[ky:ky + TR, LP - 1 + kx:LP - 1 + kx + W, :]
            acc = acc + tap * dw_ref[ky, kx]

    # --- pointwise 1x1 (single MXU matmul) ----------------------------------
    y = jnp.dot(acc.reshape(TR * W, C1), pw_ref[...],
                preferred_element_type=jnp.float32)
    nf1_ref[0] = y.reshape(TR, W, Cg).astype(nf1_ref.dtype)


# ----------------------------------------------------------------------------
# Model wrapper
# ----------------------------------------------------------------------------
@jax.jit
def dense_model_forward(x_nchw, p):
    x = jnp.transpose(x_nchw, (0, 2, 3, 1)).astype(jnp.float32)   # NCHW -> NHWC
    N, H, W, Cin = x.shape
    TR = next(d for d in (8, 4, 2, 1) if H % d == 0)
    R = H // TR

    # Wrapper-side K=27 im2col of the tiny 3-channel input (rows j=0..H+1 are
    # conv0 output rows j-1, i.e. a one-row halo for the fused depthwise).
    xpad = jnp.pad(x, ((0, 0), (2, 2), (1, 1), (0, 0)))
    taps = [xpad[:, ky:ky + H + 2, kx:kx + W, :]
            for ky in range(3) for kx in range(3)]
    xcol = jnp.concatenate(taps, axis=-1)                  # (N, H+2, W, 27)

    w0c = p["w0"].reshape(-1, p["w0"].shape[-1])           # (27, 64)
    C0 = w0c.shape[1]
    C1 = p["w1"].shape[1]
    Cg = p["pw2"].shape[1]
    K = xcol.shape[-1]

    x2k, nf1 = pl.pallas_call(
        _fused_dense_kernel,
        out_shape=(
            jax.ShapeDtypeStruct((N, H, W, C1 + C0), x.dtype),   # [b1 | x0]
            jax.ShapeDtypeStruct((N, H, W, Cg), x.dtype),
        ),
        grid=(N, R),
        in_specs=[
            pl.BlockSpec((1, H + 2, W, K), lambda n, r: (n, 0, 0, 0)),
            pl.BlockSpec((K, C0), lambda n, r: (0, 0)),
            pl.BlockSpec((1, C0), lambda n, r: (0, 0)),
            pl.BlockSpec((1, C0), lambda n, r: (0, 0)),
            pl.BlockSpec((C0, C1), lambda n, r: (0, 0)),
            pl.BlockSpec((1, C1), lambda n, r: (0, 0)),
            pl.BlockSpec((1, C1), lambda n, r: (0, 0)),
            pl.BlockSpec((3, 3, C1), lambda n, r: (0, 0, 0)),
            pl.BlockSpec((C1, Cg), lambda n, r: (0, 0)),
        ],
        out_specs=(
            pl.BlockSpec((1, TR, W, C1 + C0), lambda n, r: (n, r, 0, 0)),
            pl.BlockSpec((1, TR, W, Cg), lambda n, r: (n, r, 0, 0)),
        ),
        scratch_shapes=[pltpu.VMEM((TR + 2, W + 16, C1), jnp.float32)],
        compiler_params=pltpu.CompilerParams(
            dimension_semantics=("parallel", "parallel"),
            vmem_limit_bytes=32 * 1024 * 1024),
    )(xcol, w0c, p["bn1_scale"], p["bn1_bias"], p["w1"],
      p["bn2_scale"], p["bn2_bias"], p["dw2"], p["pw2"])

    # Restore cat([x0, b1]) channel order while doing the (anyway required)
    # NHWC -> NCHW transpose; no extra HBM pass versus a plain transpose.
    nf1_nchw = jnp.transpose(nf1, (0, 3, 1, 2))
    x2_nchw = jnp.concatenate(
        [jnp.transpose(x2k[..., C1:C1 + C0], (0, 3, 1, 2)),
         jnp.transpose(x2k[..., :C1], (0, 3, 1, 2))], axis=1)

    # TODO(synk): the PyTorch forward has no return statement (and never uses
    # bn3/conv3/bn4/conv4); we return the last tensors it computes, in NCHW.
    return nf1_nchw, x2_nchw


# ----------------------------------------------------------------------------
# Deterministic parameters (inference-mode BN folded to scale/bias)
# ----------------------------------------------------------------------------
def init_params(key, growth_rate=32, num_init_features=64, bn_size=4):
    c0_in, c0_out = 3, num_init_features          # 3 -> 64
    c1_out = bn_size * growth_rate                # 128
    c2_out = growth_rate                          # 32
    ks = jax.random.split(key, 6)

    def bn_fold(k, c):
        kg, kb, km, kv = jax.random.split(k, 4)
        gamma = 1.0 + 0.1 * jax.random.normal(kg, (c,), jnp.float32)
        beta = 0.1 * jax.random.normal(kb, (c,), jnp.float32)
        mean = 0.1 * jax.random.normal(km, (c,), jnp.float32)
        var = jax.random.uniform(kv, (c,), jnp.float32, minval=0.5, maxval=1.5)
        scale = gamma / jnp.sqrt(var + 1e-5)
        bias = beta - mean * scale
        return scale.reshape(1, c), bias.reshape(1, c)

    bn1_s, bn1_b = bn_fold(ks[0], c0_out)
    bn2_s, bn2_b = bn_fold(ks[1], c1_out)
    return {
        "w0": 0.2 * jax.random.normal(ks[2], (3, 3, c0_in, c0_out), jnp.float32),
        "bn1_scale": bn1_s, "bn1_bias": bn1_b,
        "w1": 0.1 * jax.random.normal(ks[3], (c0_out, c1_out), jnp.float32),
        "bn2_scale": bn2_s, "bn2_bias": bn2_b,
        "dw2": 0.2 * jax.random.normal(ks[4], (3, 3, c1_out), jnp.float32),
        "pw2": 0.1 * jax.random.normal(ks[5], (c1_out, c2_out), jnp.float32),
    }


# ----------------------------------------------------------------------------
# Pure-JAX reference (correctness check)
# ----------------------------------------------------------------------------
def ref_forward(x_nchw, p):
    dn = ("NHWC", "HWIO", "NHWC")
    prec = lax.Precision.HIGHEST
    x = jnp.transpose(x_nchw, (0, 2, 3, 1))
    x0 = lax.conv_general_dilated(x, p["w0"], (1, 1), "SAME",
                                  dimension_numbers=dn, precision=prec)
    b1 = jnp.maximum(x0 * p["bn1_scale"].reshape(1, 1, 1, -1)
                     + p["bn1_bias"].reshape(1, 1, 1, -1), 0.0)
    w1 = p["w1"].reshape(1, 1, *p["w1"].shape)
    b1 = lax.conv_general_dilated(b1, w1, (1, 1), "SAME",
                                  dimension_numbers=dn, precision=prec)
    b1 = jnp.maximum(b1 * p["bn2_scale"].reshape(1, 1, 1, -1)
                     + p["bn2_bias"].reshape(1, 1, 1, -1), 0.0)
    C = b1.shape[-1]
    dw = p["dw2"][:, :, None, :]                       # (3,3,1,C), groups=C
    d = lax.conv_general_dilated(b1, dw, (1, 1), "SAME",
                                 dimension_numbers=dn,
                                 feature_group_count=C, precision=prec)
    pw = p["pw2"].reshape(1, 1, *p["pw2"].shape)
    nf1 = lax.conv_general_dilated(d, pw, (1, 1), "SAME",
                                   dimension_numbers=dn, precision=prec)
    x2 = jnp.concatenate([x0, b1], axis=-1)
    return (jnp.transpose(nf1, (0, 3, 1, 2)),
            jnp.transpose(x2, (0, 3, 1, 2)))


if __name__ == "__main__":
    key = jax.random.PRNGKey(0)
    kx_, kp = jax.random.split(key)
    x = jax.random.normal(kx_, (2, 3, 16, 16), jnp.float32)   # PyTorch NCHW input
    params = init_params(kp)

    out_nf1, out_x2 = dense_model_forward(x, params)
    out_nf1 = jax.block_until_ready(out_nf1)
    out_x2 = jax.block_until_ready(out_x2)

    ref_nf1, ref_x2 = ref_forward(x, params)

    assert out_nf1.shape == (2, 32, 16, 16), out_nf1.shape
    assert out_x2.shape == (2, 192, 16, 16), out_x2.shape
    assert jnp.allclose(out_nf1, ref_nf1, rtol=2e-3, atol=2e-3), \
        float(jnp.max(jnp.abs(out_nf1 - ref_nf1)))
    assert jnp.allclose(out_x2, ref_x2, rtol=2e-3, atol=2e-3), \
        float(jnp.max(jnp.abs(out_x2 - ref_x2)))

    print("KERNEL_OK")
</pallas_src>

<mosaic_0001>
module attributes {stable_mosaic.version = 11 : i64} {
  func.func @_fused_dense_kernel(%arg0: i32, %arg1: i32, %arg2: memref<1x18x16x27xf32, #tpu.memory_space<vmem>>, %arg3: memref<27x64xf32, #tpu.memory_space<vmem>>, %arg4: memref<1x64xf32, #tpu.memory_space<vmem>>, %arg5: memref<1x64xf32, #tpu.memory_space<vmem>>, %arg6: memref<64x128xf32, #tpu.memory_space<vmem>>, %arg7: memref<1x128xf32, #tpu.memory_space<vmem>>, %arg8: memref<1x128xf32, #tpu.memory_space<vmem>>, %arg9: memref<3x3x128xf32, #tpu.memory_space<vmem>>, %arg10: memref<128x32xf32, #tpu.memory_space<vmem>>, %arg11: memref<1x8x16x192xf32, #tpu.memory_space<vmem>>, %arg12: memref<1x8x16x32xf32, #tpu.memory_space<vmem>>, %arg13: memref<10x32x128xf32, #tpu.memory_space<vmem>>) attributes {dimension_semantics = [#tpu.dimension_semantics<parallel>, #tpu.dimension_semantics<parallel>], iteration_bounds = array<i64: 2, 2>, scalar_prefetch = 0 : i64, scratch_operands = 1 : i64, tpu.core_type = #tpu.core_type<tc>, window_params = [{transform_indices = @transform_0, window_bounds = array<i64: 1, 18, 16, 27>}, {pipeline_mode = #tpu.pipeline_mode<synchronous>, transform_indices = @transform_1, window_bounds = array<i64: 27, 64>}, {pipeline_mode = #tpu.pipeline_mode<synchronous>, transform_indices = @transform_2, window_bounds = array<i64: 1, 64>}, {pipeline_mode = #tpu.pipeline_mode<synchronous>, transform_indices = @transform_3, window_bounds = array<i64: 1, 64>}, {pipeline_mode = #tpu.pipeline_mode<synchronous>, transform_indices = @transform_4, window_bounds = array<i64: 64, 128>}, {pipeline_mode = #tpu.pipeline_mode<synchronous>, transform_indices = @transform_5, window_bounds = array<i64: 1, 128>}, {pipeline_mode = #tpu.pipeline_mode<synchronous>, transform_indices = @transform_6, window_bounds = array<i64: 1, 128>}, {pipeline_mode = #tpu.pipeline_mode<synchronous>, transform_indices = @transform_7, window_bounds = array<i64: 3, 3, 128>}, {pipeline_mode = #tpu.pipeline_mode<synchronous>, transform_indices = @transform_8, window_bounds = array<i64: 128, 32>}, {transform_indices = @transform_9, window_bounds = array<i64: 1, 8, 16, 192>}, {transform_indices = @transform_10, window_bounds = array<i64: 1, 8, 16, 32>}]} {
    %c8_i32 = arith.constant 8 : i32
    %0 = arith.muli %arg1, %c8_i32 : i32
    %1 = tpu.assume_multiple %0, 8 : i32
    %c0 = arith.constant 0 : index
    %2 = arith.index_cast %1 : i32 to index
    %c0_0 = arith.constant 0 : index
    %c0_1 = arith.constant 0 : index
    %3 = vector.load %arg2[%c0, %2, %c0_0, %c0_1] : memref<1x18x16x27xf32, #tpu.memory_space<vmem>>, vector<1x10x16x27xf32>
    %4 = vector.shape_cast %3 : vector<1x10x16x27xf32> to vector<10x16x27xf32>
    %5 = vector.shape_cast %4 : vector<10x16x27xf32> to vector<160x27xf32>
    %c0_2 = arith.constant 0 : index
    %c0_3 = arith.constant 0 : index
    %6 = vector.load %arg3[%c0_2, %c0_3] : memref<27x64xf32, #tpu.memory_space<vmem>>, vector<27x64xf32>
    %cst = arith.constant dense<0.000000e+00> : vector<160x64xf32>
    %7 = tpu.matmul %5, %6, %cst {dimension_numbers = #tpu.dot_dimension_numbers<[1], [0], [0], [1], [0, 0, 1, 1], [], []>} : vector<160x27xf32>, vector<27x64xf32>, vector<160x64xf32> -> vector<160x64xf32>
    %c0_4 = arith.constant 0 : index
    %c0_5 = arith.constant 0 : index
    %8 = vector.load %arg4[%c0_4, %c0_5] : memref<1x64xf32, #tpu.memory_space<vmem>>, vector<1x64xf32>
    %9 = vector.broadcast %8 : vector<1x64xf32> to vector<160x64xf32>
    %10 = arith.mulf %7, %9 : vector<160x64xf32>
    %c0_6 = arith.constant 0 : index
    %c0_7 = arith.constant 0 : index
    %11 = vector.load %arg5[%c0_6, %c0_7] : memref<1x64xf32, #tpu.memory_space<vmem>>, vector<1x64xf32>
    %12 = vector.broadcast %11 : vector<1x64xf32> to vector<160x64xf32>
    %13 = arith.addf %10, %12 : vector<160x64xf32>
    %cst_8 = arith.constant 0.000000e+00 : f32
    %14 = vector.broadcast %cst_8 : f32 to vector<160x64xf32>
    %15 = arith.maximumf %13, %14 : vector<160x64xf32>
    %c0_9 = arith.constant 0 : index
    %c0_10 = arith.constant 0 : index
    %16 = vector.load %arg6[%c0_9, %c0_10] : memref<64x128xf32, #tpu.memory_space<vmem>>, vector<64x128xf32>
    %cst_11 = arith.constant dense<0.000000e+00> : vector<160x128xf32>
    %17 = tpu.matmul %15, %16, %cst_11 {dimension_numbers = #tpu.dot_dimension_numbers<[1], [0], [0], [1], [0, 0, 1, 1], [], []>} : vector<160x64xf32>, vector<64x128xf32>, vector<160x128xf32> -> vector<160x128xf32>
    %c0_12 = arith.constant 0 : index
    %c0_13 = arith.constant 0 : index
    %18 = vector.load %arg7[%c0_12, %c0_13] : memref<1x128xf32, #tpu.memory_space<vmem>>, vector<1x128xf32>
    %19 = vector.broadcast %18 : vector<1x128xf32> to vector<160x128xf32>
    %20 = arith.mulf %17, %19 : vector<160x128xf32>
    %c0_14 = arith.constant 0 : index
    %c0_15 = arith.constant 0 : index
    %21 = vector.load %arg8[%c0_14, %c0_15] : memref<1x128xf32, #tpu.memory_space<vmem>>, vector<1x128xf32>
    %22 = vector.broadcast %21 : vector<1x128xf32> to vector<160x128xf32>
    %23 = arith.addf %20, %22 : vector<160x128xf32>
    %cst_16 = arith.constant 0.000000e+00 : f32
    %24 = vector.broadcast %cst_16 : f32 to vector<160x128xf32>
    %25 = arith.maximumf %23, %24 : vector<160x128xf32>
    %26 = vector.shape_cast %25 : vector<160x128xf32> to vector<10x16x128xf32>
    %c1_i32 = arith.constant 1 : i32
    %27 = arith.subi %1, %c1_i32 : i32
    %28 = tpu.iota {dimensions = array<i32: 0>} : vector<10x1x1xi32>
    %29 = vector.broadcast %27 : i32 to vector<10x1x1xi32>
    %30 = arith.addi %29, %28 : vector<10x1x1xi32>
    %c0_i32 = arith.constant 0 : i32
    %31 = vector.broadcast %c0_i32 : i32 to vector<10x1x1xi32>
    %32 = arith.cmpi sge, %30, %31 : vector<10x1x1xi32>
    %c16_i32 = arith.constant 16 : i32
    %33 = vector.broadcast %c16_i32 : i32 to vector<10x1x1xi32>
    %34 = arith.cmpi slt, %30, %33 : vector<10x1x1xi32>
    %35 = arith.andi %32, %34 : vector<10x1x1xi1>
    %cst_17 = arith.constant 0.000000e+00 : f32
    %36 = vector.shape_cast %35 : vector<10x1x1xi1> to vector<10x1x1xi1>
    %37 = vector.broadcast %36 : vector<10x1x1xi1> to vector<10x16x128xi1>
    %38 = vector.broadcast %cst_17 : f32 to vector<10x16x128xf32>
    %39 = arith.select %37, %26, %38 : vector<10x16x128xi1>, vector<10x16x128xf32>
    %40 = vector.shape_cast %7 : vector<160x64xf32> to vector<10x16x64xf32>
    %41 = vector.extract_strided_slice %40 {offsets = [1, 0, 0], sizes = [8, 16, 64], strides = [1, 1, 1]} : vector<10x16x64xf32> to vector<8x16x64xf32>
    %42 = vector.extract_strided_slice %39 {offsets = [1, 0, 0], sizes = [8, 16, 128], strides = [1, 1, 1]} : vector<10x16x128xf32> to vector<8x16x128xf32>
    %c0_18 = arith.constant 0 : index
    %c0_19 = arith.constant 0 : index
    %c0_20 = arith.constant 0 : index
    %c0_21 = arith.constant 0 : index
    %43 = vector.load %arg11[%c0_18, %c0_19, %c0_20, %c0_21] : memref<1x8x16x192xf32, #tpu.memory_space<vmem>>, vector<1x8x16x128xf32>
    %44 = vector.shape_cast %43 : vector<1x8x16x128xf32> to vector<8x16x128xf32>
    %45 = vector.shape_cast %42 : vector<8x16x128xf32> to vector<1x8x16x128xf32>
    tpu.vector_store %arg11[%c0_18, %c0_19, %c0_20, %c0_21], %45 {strides = array<i32>} : memref<1x8x16x192xf32, #tpu.memory_space<vmem>>, vector<1x8x16x128xf32>,
    %c0_22 = arith.constant 0 : index
    %c0_23 = arith.constant 0 : index
    %c0_24 = arith.constant 0 : index
    %c128 = arith.constant 128 : index
    %46 = vector.load %arg11[%c0_22, %c0_23, %c0_24, %c128] : memref<1x8x16x192xf32, #tpu.memory_space<vmem>>, vector<1x8x16x64xf32>
    %47 = vector.shape_cast %46 : vector<1x8x16x64xf32> to vector<8x16x64xf32>
    %48 = vector.shape_cast %41 : vector<8x16x64xf32> to vector<1x8x16x64xf32>
    tpu.vector_store %arg11[%c0_22, %c0_23, %c0_24, %c128], %48 {strides = array<i32>} : memref<1x8x16x192xf32, #tpu.memory_space<vmem>>, vector<1x8x16x64xf32>,
    %cst_25 = arith.constant 0.000000e+00 : f32
    %49 = vector.broadcast %cst_25 : f32 to vector<10x8x128xf32>
    %c0_26 = arith.constant 0 : index
    %c0_27 = arith.constant 0 : index
    %c0_28 = arith.constant 0 : index
    %50 = vector.load %arg13[%c0_26, %c0_27, %c0_28] : memref<10x32x128xf32, #tpu.memory_space<vmem>>, vector<10x8x128xf32>
    tpu.vector_store %arg13[%c0_26, %c0_27, %c0_28], %49 {strides = array<i32>} : memref<10x32x128xf32, #tpu.memory_space<vmem>>, vector<10x8x128xf32>,
    %c0_29 = arith.constant 0 : index
    %c24 = arith.constant 24 : index
    %c0_30 = arith.constant 0 : index
    %51 = vector.load %arg13[%c0_29, %c24, %c0_30] : memref<10x32x128xf32, #tpu.memory_space<vmem>>, vector<10x8x128xf32>
    tpu.vector_store %arg13[%c0_29, %c24, %c0_30], %49 {strides = array<i32>} : memref<10x32x128xf32, #tpu.memory_space<vmem>>, vector<10x8x128xf32>,
    %c0_31 = arith.constant 0 : index
    %c8 = arith.constant 8 : index
    %c0_32 = arith.constant 0 : index
    %52 = vector.load %arg13[%c0_31, %c8, %c0_32] : memref<10x32x128xf32, #tpu.memory_space<vmem>>, vector<10x16x128xf32>
    tpu.vector_store %arg13[%c0_31, %c8, %c0_32], %39 {strides = array<i32>} : memref<10x32x128xf32, #tpu.memory_space<vmem>>, vector<10x16x128xf32>,
    %cst_33 = arith.constant 0.000000e+00 : f32
    %53 = vector.broadcast %cst_33 : f32 to vector<8x16x128xf32>
    %c0_34 = arith.constant 0 : index
    %c7 = arith.constant 7 : index
    %c0_35 = arith.constant 0 : index
    %54 = vector.load %arg13[%c0_34, %c7, %c0_35] : memref<10x32x128xf32, #tpu.memory_space<vmem>>, vector<8x16x128xf32>
    %c0_36 = arith.constant 0 : index
    %c0_37 = arith.constant 0 : index
    %c0_38 = arith.constant 0 : index
    %55 = vector.load %arg9[%c0_36, %c0_37, %c0_38] : memref<3x3x128xf32, #tpu.memory_space<vmem>>, vector<1x1x128xf32>
    %56 = vector.shape_cast %55 : vector<1x1x128xf32> to vector<128xf32>
    %57 = vector.shape_cast %56 : vector<128xf32> to vector<1x1x128xf32>
    %58 = vector.broadcast %57 : vector<1x1x128xf32> to vector<8x16x128xf32>
    %59 = arith.mulf %54, %58 : vector<8x16x128xf32>
    %60 = arith.addf %53, %59 : vector<8x16x128xf32>
    %c0_39 = arith.constant 0 : index
    %c8_40 = arith.constant 8 : index
    %c0_41 = arith.constant 0 : index
    %61 = vector.load %arg13[%c0_39, %c8_40, %c0_41] : memref<10x32x128xf32, #tpu.memory_space<vmem>>, vector<8x16x128xf32>
    %c0_42 = arith.constant 0 : index
    %c1 = arith.constant 1 : index
    %c0_43 = arith.constant 0 : index
    %62 = vector.load %arg9[%c0_42, %c1, %c0_43] : memref<3x3x128xf32, #tpu.memory_space<vmem>>, vector<1x1x128xf32>
    %63 = vector.shape_cast %62 : vector<1x1x128xf32> to vector<128xf32>
    %64 = vector.shape_cast %63 : vector<128xf32> to vector<1x1x128xf32>
    %65 = vector.broadcast %64 : vector<1x1x128xf32> to vector<8x16x128xf32>
    %66 = arith.mulf %61, %65 : vector<8x16x128xf32>
    %67 = arith.addf %60, %66 : vector<8x16x128xf32>
    %c0_44 = arith.constant 0 : index
    %c9 = arith.constant 9 : index
    %c0_45 = arith.constant 0 : index
    %68 = vector.load %arg13[%c0_44, %c9, %c0_45] : memref<10x32x128xf32, #tpu.memory_space<vmem>>, vector<8x16x128xf32>
    %c0_46 = arith.constant 0 : index
    %c2 = arith.constant 2 : index
    %c0_47 = arith.constant 0 : index
    %69 = vector.load %arg9[%c0_46, %c2, %c0_47] : memref<3x3x128xf32, #tpu.memory_space<vmem>>, vector<1x1x128xf32>
    %70 = vector.shape_cast %69 : vector<1x1x128xf32> to vector<128xf32>
    %71 = vector.shape_cast %70 : vector<128xf32> to vector<1x1x128xf32>
    %72 = vector.broadcast %71 : vector<1x1x128xf32> to vector<8x16x128xf32>
    %73 = arith.mulf %68, %72 : vector<8x16x128xf32>
    %74 = arith.addf %67, %73 : vector<8x16x128xf32>
    %c1_48 = arith.constant 1 : index
    %c7_49 = arith.constant 7 : index
    %c0_50 = arith.constant 0 : index
    %75 = vector.load %arg13[%c1_48, %c7_49, %c0_50] : memref<10x32x128xf32, #tpu.memory_space<vmem>>, vector<8x16x128xf32>
    %c1_51 = arith.constant 1 : index
    %c0_52 = arith.constant 0 : index
    %c0_53 = arith.constant 0 : index
    %76 = vector.load %arg9[%c1_51, %c0_52, %c0_53] : memref<3x3x128xf32, #tpu.memory_space<vmem>>, vector<1x1x128xf32>
    %77 = vector.shape_cast %76 : vector<1x1x128xf32> to vector<128xf32>
    %78 = vector.shape_cast %77 : vector<128xf32> to vector<1x1x128xf32>
    %79 = vector.broadcast %78 : vector<1x1x128xf32> to vector<8x16x128xf32>
    %80 = arith.mulf %75, %79 : vector<8x16x128xf32>
    %81 = arith.addf %74, %80 : vector<8x16x128xf32>
    %c1_54 = arith.constant 1 : index
    %c8_55 = arith.constant 8 : index
    %c0_56 = arith.constant 0 : index
    %82 = vector.load %arg13[%c1_54, %c8_55, %c0_56] : memref<10x32x128xf32, #tpu.memory_space<vmem>>, vector<8x16x128xf32>
    %c1_57 = arith.constant 1 : index
    %c1_58 = arith.constant 1 : index
    %c0_59 = arith.constant 0 : index
    %83 = vector.load %arg9[%c1_57, %c1_58, %c0_59] : memref<3x3x128xf32, #tpu.memory_space<vmem>>, vector<1x1x128xf32>
    %84 = vector.shape_cast %83 : vector<1x1x128xf32> to vector<128xf32>
    %85 = vector.shape_cast %84 : vector<128xf32> to vector<1x1x128xf32>
    %86 = vector.broadcast %85 : vector<1x1x128xf32> to vector<8x16x128xf32>
    %87 = arith.mulf %82, %86 : vector<8x16x128xf32>
    %88 = arith.addf %81, %87 : vector<8x16x128xf32>
    %c1_60 = arith.constant 1 : index
    %c9_61 = arith.constant 9 : index
    %c0_62 = arith.constant 0 : index
    %89 = vector.load %arg13[%c1_60, %c9_61, %c0_62] : memref<10x32x128xf32, #tpu.memory_space<vmem>>, vector<8x16x128xf32>
    %c1_63 = arith.constant 1 : index
    %c2_64 = arith.constant 2 : index
    %c0_65 = arith.constant 0 : index
    %90 = vector.load %arg9[%c1_63, %c2_64, %c0_65] : memref<3x3x128xf32, #tpu.memory_space<vmem>>, vector<1x1x128xf32>
    %91 = vector.shape_cast %90 : vector<1x1x128xf32> to vector<128xf32>
    %92 = vector.shape_cast %91 : vector<128xf32> to vector<1x1x128xf32>
    %93 = vector.broadcast %92 : vector<1x1x128xf32> to vector<8x16x128xf32>
    %94 = arith.mulf %89, %93 : vector<8x16x128xf32>
    %95 = arith.addf %88, %94 : vector<8x16x128xf32>
    %c2_66 = arith.constant 2 : index
    %c7_67 = arith.constant 7 : index
    %c0_68 = arith.constant 0 : index
    %96 = vector.load %arg13[%c2_66, %c7_67, %c0_68] : memref<10x32x128xf32, #tpu.memory_space<vmem>>, vector<8x16x128xf32>
    %c2_69 = arith.constant 2 : index
    %c0_70 = arith.constant 0 : index
    %c0_71 = arith.constant 0 : index
    %97 = vector.load %arg9[%c2_69, %c0_70, %c0_71] : memref<3x3x128xf32, #tpu.memory_space<vmem>>, vector<1x1x128xf32>
    %98 = vector.shape_cast %97 : vector<1x1x128xf32> to vector<128xf32>
    %99 = vector.shape_cast %98 : vector<128xf32> to vector<1x1x128xf32>
    %100 = vector.broadcast %99 : vector<1x1x128xf32> to vector<8x16x128xf32>
    %101 = arith.mulf %96, %100 : vector<8x16x128xf32>
    %102 = arith.addf %95, %101 : vector<8x16x128xf32>
    %c2_72 = arith.constant 2 : index
    %c8_73 = arith.constant 8 : index
    %c0_74 = arith.constant 0 : index
    %103 = vector.load %arg13[%c2_72, %c8_73, %c0_74] : memref<10x32x128xf32, #tpu.memory_space<vmem>>, vector<8x16x128xf32>
    %c2_75 = arith.constant 2 : index
    %c1_76 = arith.constant 1 : index
    %c0_77 = arith.constant 0 : index
    %104 = vector.load %arg9[%c2_75, %c1_76, %c0_77] : memref<3x3x128xf32, #tpu.memory_space<vmem>>, vector<1x1x128xf32>
    %105 = vector.shape_cast %104 : vector<1x1x128xf32> to vector<128xf32>
    %106 = vector.shape_cast %105 : vector<128xf32> to vector<1x1x128xf32>
    %107 = vector.broadcast %106 : vector<1x1x128xf32> to vector<8x16x128xf32>
    %108 = arith.mulf %103, %107 : vector<8x16x128xf32>
    %109 = arith.addf %102, %108 : vector<8x16x128xf32>
    %c2_78 = arith.constant 2 : index
    %c9_79 = arith.constant 9 : index
    %c0_80 = arith.constant 0 : index
    %110 = vector.load %arg13[%c2_78, %c9_79, %c0_80] : memref<10x32x128xf32, #tpu.memory_space<vmem>>, vector<8x16x128xf32>
    %c2_81 = arith.constant 2 : index
    %c2_82 = arith.constant 2 : index
    %c0_83 = arith.constant 0 : index
    %111 = vector.load %arg9[%c2_81, %c2_82, %c0_83] : memref<3x3x128xf32, #tpu.memory_space<vmem>>, vector<1x1x128xf32>
    %112 = vector.shape_cast %111 : vector<1x1x128xf32> to vector<128xf32>
    %113 = vector.shape_cast %112 : vector<128xf32> to vector<1x1x128xf32>
    %114 = vector.broadcast %113 : vector<1x1x128xf32> to vector<8x16x128xf32>
    %115 = arith.mulf %110, %114 : vector<8x16x128xf32>
    %116 = arith.addf %109, %115 : vector<8x16x128xf32>
    %117 = vector.shape_cast %116 : vector<8x16x128xf32> to vector<128x128xf32>
    %c0_84 = arith.constant 0 : index
    %c0_85 = arith.constant 0 : index
    %118 = vector.load %arg10[%c0_84, %c0_85] : memref<128x32xf32, #tpu.memory_space<vmem>>, vector<128x32xf32>
    %cst_86 = arith.constant dense<0.000000e+00> : vector<128x32xf32>
    %119 = tpu.matmul %117, %118, %cst_86 {dimension_numbers = #tpu.dot_dimension_numbers<[1], [0], [0], [1], [0, 0, 1, 1], [], []>} : vector<128x128xf32>, vector<128x32xf32>, vector<128x32xf32> -> vector<128x32xf32>
    %120 = vector.shape_cast %119 : vector<128x32xf32> to vector<8x16x32xf32>
    %c0_87 = arith.constant 0 : index
    %c0_88 = arith.constant 0 : index
    %c0_89 = arith.constant 0 : index
    %c0_90 = arith.constant 0 : index
    %121 = vector.load %arg12[%c0_87, %c0_88, %c0_89, %c0_90] : memref<1x8x16x32xf32, #tpu.memory_space<vmem>>, vector<1x8x16x32xf32>
    %122 = vector.shape_cast %121 : vector<1x8x16x32xf32> to vector<8x16x32xf32>
    %123 = vector.shape_cast %120 : vector<8x16x32xf32> to vector<1x8x16x32xf32>
    tpu.vector_store %arg12[%c0_87, %c0_88, %c0_89, %c0_90], %123 {strides = array<i32>} : memref<1x8x16x32xf32, #tpu.memory_space<vmem>>, vector<1x8x16x32xf32>,
    return
  }
  func.func @transform_0(%arg0: i32, %arg1: i32) -> (i32, i32, i32, i32) {
    %c0_i32 = arith.constant 0 : i32
    %c0_i32_0 = arith.constant 0 : i32
    %c0_i32_1 = arith.constant 0 : i32
    %c0_i32_2 = arith.constant 0 : i32
    return %arg0, %c0_i32, %c0_i32_0, %c0_i32_1 : i32, i32, i32, i32
  }
  func.func @transform_1(%arg0: i32, %arg1: i32) -> (i32, i32) {
    %c0_i32 = arith.constant 0 : i32
    %c0_i32_0 = arith.constant 0 : i32
    %c0_i32_1 = arith.constant 0 : i32
    return %c0_i32, %c0_i32_0 : i32, i32
  }
  func.func @transform_2(%arg0: i32, %arg1: i32) -> (i32, i32) {
    %c0_i32 = arith.constant 0 : i32
    %c0_i32_0 = arith.constant 0 : i32
    %c0_i32_1 = arith.constant 0 : i32
    return %c0_i32, %c0_i32_0 : i32, i32
  }
  func.func @transform_3(%arg0: i32, %arg1: i32) -> (i32, i32) {
    %c0_i32 = arith.constant 0 : i32
    %c0_i32_0 = arith.constant 0 : i32
    %c0_i32_1 = arith.constant 0 : i32
    return %c0_i32, %c0_i32_0 : i32, i32
  }
  func.func @transform_4(%arg0: i32, %arg1: i32) -> (i32, i32) {
    %c0_i32 = arith.constant 0 : i32
    %c0_i32_0 = arith.constant 0 : i32
    %c0_i32_1 = arith.constant 0 : i32
    return %c0_i32, %c0_i32_0 : i32, i32
  }
  func.func @transform_5(%arg0: i32, %arg1: i32) -> (i32, i32) {
    %c0_i32 = arith.constant 0 : i32
    %c0_i32_0 = arith.constant 0 : i32
    %c0_i32_1 = arith.constant 0 : i32
    return %c0_i32, %c0_i32_0 : i32, i32
  }
  func.func @transform_6(%arg0: i32, %arg1: i32) -> (i32, i32) {
    %c0_i32 = arith.constant 0 : i32
    %c0_i32_0 = arith.constant 0 : i32
    %c0_i32_1 = arith.constant 0 : i32
    return %c0_i32, %c0_i32_0 : i32, i32
  }
  func.func @transform_7(%arg0: i32, %arg1: i32) -> (i32, i32, i32) {
    %c0_i32 = arith.constant 0 : i32
    %c0_i32_0 = arith.constant 0 : i32
    %c0_i32_1 = arith.constant 0 : i32
    %c0_i32_2 = arith.constant 0 : i32
    return %c0_i32, %c0_i32_0, %c0_i32_1 : i32, i32, i32
  }
  func.func @transform_8(%arg0: i32, %arg1: i32) -> (i32, i32) {
    %c0_i32 = arith.constant 0 : i32
    %c0_i32_0 = arith.constant 0 : i32
    %c0_i32_1 = arith.constant 0 : i32
    return %c0_i32, %c0_i32_0 : i32, i32
  }
  func.func @transform_9(%arg0: i32, %arg1: i32) -> (i32, i32, i32, i32) {
    %c0_i32 = arith.constant 0 : i32
    %c0_i32_0 = arith.constant 0 : i32
    %c0_i32_1 = arith.constant 0 : i32
    return %arg0, %arg1, %c0_i32, %c0_i32_0 : i32, i32, i32, i32
  }
  func.func @transform_10(%arg0: i32, %arg1: i32) -> (i32, i32, i32, i32) {
    %c0_i32 = arith.constant 0 : i32
    %c0_i32_0 = arith.constant 0 : i32
    %c0_i32_1 = arith.constant 0 : i32
    return %arg0, %arg1, %c0_i32, %c0_i32_0 : i32, i32, i32, i32
  }
}

</mosaic_0001>

<bundles_post_ra>
// kernel: dense_model_forward.1
= control target key start
LH: loop header
LB: loop body
LE: loop exit
PB: predicated region body
PF: predicated region fallthrough
CT: control target
= control target key end

     0   :  { %s3606_s0 = inlined_call_operand.vmem [shape: f32[2,18,16,27], index: 0, kind: input, shape index: {}]   ;;  %s3607_s1 = inlined_call_operand.vmem [shape: f32[27,64], index: 1, kind: input, shape index: {}]   ;;  %s3608_s2 = inlined_call_operand.vmem [shape: f32[1,64], index: 2, kind: input, shape index: {}]   ;;  %s3609_s3 = inlined_call_operand.vmem [shape: f32[1,64], index: 3, kind: input, shape index: {}]   ;;  %s3610_s4 = inlined_call_operand.vmem [shape: f32[64,128], index: 4, kind: input, shape index: {}]   ;;  %s3611_s5 = inlined_call_operand.vmem [shape: f32[1,128], index: 5, kind: input, shape index: {}]   ;;  %s3612_s6 = inlined_call_operand.vmem [shape: f32[1,128], index: 6, kind: input, shape index: {}]   ;;  %s3613_s7 = inlined_call_operand.vmem [shape: f32[3,3,128], index: 7, kind: input, shape index: {}]   ;;  %s3614_s8 = inlined_call_operand.vmem [shape: f32[128,32], index: 8, kind: input, shape index: {}]   ;;  %s3615_s9 = inlined_call_operand.vmem [shape: f32[2,16,16,192], index: 9, kind: output, shape index: {0}]   ;;  %s3616_s10 = inlined_call_operand.hbm [shape: f32[2,16,16,32], index: 10, kind: output, shape index: {1}]  }
   0x1   :  { %3620 = sst [smem:[#allocation9_spill]] %s3606_s0 }
   0x2   :  { %3621 = sst [smem:[#allocation10_spill]] %s3607_s1 }
   0x3   :  { %16 = vsyncpa [#allocation4], 0 }
   0x4   :  { %18 = vsyncpa [#allocation4 + $0x1], 0  ;;  %s2614_s13 = smov 0   ;;  %s2616_s14 = smov 0  }
   0x5   :  { %s2618_s15 = smov 0   ;;  %s2620_s16 = smov 0  }
   0x6   :  { %s2622_s17 = smov 0   ;;  %s2624_s18 = smov 0  }
   0x7   :  { %s2626_s19 = smov 0   ;;  %s2628_s20 = smov 0  }
   0x8 LB: > { %3622 = sst [smem:[#allocation6_spill]] %s2544_s18  ;;  %s2001_s21 = sadd.s32 4294967295, %s2552_s20   ;;  %s2552_s20 = sphi %s2628_s20, %s24_s20   ;;  %s2548_s19 = sphi %s2626_s19, %s3658_s19   ;;  %s2544_s18 = sphi %s2624_s18, %s3653_s18   ;;  %s2540_s17 = sphi %s2622_s17, %s3657_s17   ;;  %s2536_s16 = sphi %s2620_s16, %s3652_s16   ;;  %s2532_s15 = sphi %s2618_s15, %s3656_s15   ;;  %s2528_s14 = sphi %s2616_s14, %s3655_s14   ;;  %s2524_s13 = sphi %s2614_s13, %s3654_s13  }
   0x9   : > { %s2002_s22 = sadd.s32 4294967294, %s2552_s20   ;;  %s33_s23 = sadd.s32 1, %s2544_s18 }
   0xa   : > { %p34_p0 = scmp.ge.s32.totalorder %s33_s23, 2  ;;  %s36_s24 = sadd.s32 1, %s2548_s19 }
   0xb   : > { %p277_p1 = scmp.ne.s32.totalorder %s2532_s15, %s2528_s14  ;;  %p278_p2 = scmp.eq.s32.totalorder %s2001_s21, 3 }
   0xc   : > { %s3660_s23 = smov (%p34_p0, %s33_s23), 0  ;;  %s3662_s24 = smov (!%p34_p0, %s36_s24), %s2548_s19 }
   0xd   : > { %3623 = sst [smem:[#allocation7_spill]] %s3660_s23  ;;  %s263_s25 = ssub.s32 %s2544_s18, %s3660_s23 }
   0xe   : > { %p2665_p3 = por %p278_p2, %p277_p1  ;;  %p38_p4 = scmp.ge.s32.totalorder %s3662_s24, 2 }
   0xf   : > { %p283_p5 = scmp.ne.s32.totalorder %s2528_s14, %s2524_s13  ;;  %p284_p6 = scmp.eq.s32.totalorder %s2002_s22, 3 }
  0x10   : > { %p2005_p7 = scmp.ge.s32.totalorder %s2552_s20, 1  ;;  %s3664_s24 = smov (%p38_p4, %s3662_s24), 0 }
  0x11   : > { %p2674_p8 = por %p284_p6, %p283_p5  ;;  %p334_p9 = scmp.lt.s32.totalorder %s2552_s20, 5 }
  0x12   : > { %s262_s28 = ssub.s32 %s2548_s19, %s3664_s24  ;;  %s267_s29 = sadd.s32 1, %s2532_s15 }
  0x13   : > { %s3625_s27 = scalar_select %p2674_p8, 1, 0 }
  0x14   : > { %s264_s30 = sor.u32 %s263_s25, %s262_s28  ;;  %p335_p10 = pnand %p2005_p7, %p334_p9 }
  0x15   : > { %3626 = sst [smem:[#allocation8_spill]] %s3625_s27  ;;  %p265_p11 = scmp.eq.s32.totalorder %s264_s30, 0  ;;  %vm487_vm0 = vcmask (!%p335_p10), 1042432   ;;  %vm2554_vm1 = vmmov (!%p335_p10), 1   ;;  %v730_v6 = vld [vmem:[%s3610_s4] sm:$0xff] (!%p335_p10)  ;;  %v731_v8 = vld [vmem:[%s3610_s4 + $0x8] sm:$0xff] (!%p335_p10) }
  0x16   : > { %338 = sbr.rel (%p335_p10) target bundleno = 803 (0x323), region = 56  ;;  %s3627_s1 = sld [smem:[#allocation10_spill]] (!%p335_p10)  ;;  %vm2698_vm2 = vmpackc.low (!%p335_p10), %vm487_vm0, %vm2554_vm1  ;;  %v732_v9 = vld [vmem:[%s3610_s4 + $0x10] sm:$0xff] (!%p335_p10)  ;;  %v733_v10 = vld [vmem:[%s3610_s4 + $0x18] sm:$0xff] (!%p335_p10)  ;;  %v2318_v11 = vpack.c.bf16 (!%p335_p10), %v731_v8, %v730_v6  ;;  %vm426_vm3 = vcmask (!%p335_p10), 220160   ;;  %vm738_vm4 = vcmask (!%p335_p10), 523264  }
  0x17   : > { %s2683_s11 = scalar_select %p265_p11, %s2532_s15, %s267_s29  }
  0x18   : > { %p382_p12 = scmp.lt.s32.totalorder (!%p335_p10), %s2540_s17, 1  ;;  %v2322_v12 = vpack.c.bf16 (!%p335_p10), %v733_v10, %v732_v9  ;;  %s2082_s29 = sshll.u32 (!%p335_p10), %s2536_s16, 7  ;;  %2319 = vmatprep.subr.bf16.mxu1 (!%p335_p10), %v2318_v11  ;;  %v734_v33 = vld [vmem:[%s3610_s4 + $0x20] sm:$0xff] (!%p335_p10)  ;;  %v735_v34 = vld [vmem:[%s3610_s4 + $0x28] sm:$0xff] (!%p335_p10)  ;;  %v736_v36 = vld [vmem:[%s3610_s4 + $0x30] sm:$0xff] (!%p335_p10) }
  0x19   : > { %s3630_s0 = sld [smem:[#allocation9_spill]] (!%p335_p10)  ;;  %2321 = vmatpush3.bf16.msra.mxu1 (!%p335_p10), %v2318_v11  ;;  %v2326_v35 = vpack.c.bf16 (!%p335_p10), %v735_v34, %v734_v33  ;;  %v737_v37 = vld [vmem:[%s3610_s4 + $0x38] sm:$0xff] (!%p335_p10)  ;;  %v2789_v39 = vld [vmem:[%s3608_s2] ss:$0 sm:$0xff] (!%p335_p10)  ;;  %s2078_s23 = sshll.u32 (!%p335_p10), %s2540_s17, 5 }
  0x1a   : > { %2323 = vmatprep.subr.bf16.mxu1 (!%p335_p10), %v2322_v12  ;;  %v2330_v38 = vpack.c.bf16 (!%p335_p10), %v737_v37, %v736_v36  ;;  %v2794_v41 = vld [vmem:[%s3609_s3] ss:$0 sm:$0xff] (!%p335_p10) }
  0x1c   : > { %v422_v0 = vld [vmem:[%s3627_s1] sm:$0xff] (!%p335_p10)  ;;  %v423_v1 = vld [vmem:[%s3627_s1 + $0x8] sm:$0xff] (!%p335_p10)  ;;  %v424_v2 = vld [vmem:[%s3627_s1 + $0x10] sm:$0xff] (!%p335_p10) }
  0x1d   : > { %v2308_v3 = vpack.c.bf16 %v423_v1, %v422_v0  ;;  %v425_v4 = vld [vmem:[%s3627_s1 + $0x18] sm:$0x7]  ;;  %s2706_s18 = scalar_select %p382_p12, %s2540_s17, 1  ;;  %2325 = vmatpush3.bf16.msra.mxu1 %v2322_v12 }
  0x1e   : > { %v2312_v7 = vpack.c.bf16 %v425_v4, %v424_v2  ;;  %2327 = vmatprep.subr.bf16.mxu1 %v2326_v35 }
  0x1f   : > { %2309 = vmatprep.subr.bf16.mxu0 %v2308_v3  ;;  %s2382_s28 = smul.u32 288, %s2706_s18  ;;  %s2010_s22 = sshll.u32 %s2706_s18, 6 }
  0x20   : > { %2311 = vmatpush3.bf16.msra.mxu0 %v2308_v3 }
  0x21   : > { %2314 = vmatprep.subr.msk.bf16.mxu0 %vm2698_vm2, %v2312_v7  ;;  %s386_s30 = scalar_lea.vmem %s3630_s0, %s2382_s28  ;;  %2329 = vmatpush3.bf16.msra.mxu1 %v2326_v35 }
  0x22   : > { %s2724_s12 = scalar_lea.vmem %s386_s30, %s2082_s29  ;;  %2331 = vmatprep.subr.bf16.mxu1 %v2330_v38 }
  0x23   : > { %v402_v13 = vld [vmem:[%s2724_s12] sm:$0xff]  ;;  %v403_v14 = vld [vmem:[%s2724_s12 + $0x8] sm:$0xff]  ;;  %v404_v15 = vld [vmem:[%s2724_s12 + $0x10] sm:$0xff] }
  0x24   : > { %2317 = vmatpush3.bf16.msk.msra.mxu0 %vm2698_vm2, %v2312_v7  ;;  %2176 = vmatprep.mubr.msk.f32.mxu0 %vm426_vm3, %v402_v13  ;;  %v405_v16 = vld [vmem:[%s2724_s12 + $0x18] sm:$0xff]  ;;  %v406_v17 = vld [vmem:[%s2724_s12 + $0x20] sm:$0xff]  ;;  %v407_v18 = vld [vmem:[%s2724_s12 + $0x28] sm:$0xff] }
  0x25   : > { %v408_v19 = vld [vmem:[%s2724_s12 + $0x30] sm:$0xff]  ;;  %v409_v20 = vld [vmem:[%s2724_s12 + $0x38] sm:$0xff]  ;;  %v410_v21 = vld [vmem:[%s2724_s12 + $0x40] sm:$0xff]  ;;  %2333 = vmatpush3.bf16.msra.mxu1 %v2330_v38 }
  0x26   : > { %v411_v22 = vld [vmem:[%s2724_s12 + $0x48] sm:$0xff]  ;;  %v412_v23 = vld [vmem:[%s2724_s12 + $0x50] sm:$0xff]  ;;  %v413_v24 = vld [vmem:[%s2724_s12 + $0x58] sm:$0xff] }
  0x27   : > { %2177 = vmatmul.mubr.msk.f32.vlgmr.msra.gmra.mrb[0].mxu0 %vm426_vm3, %v403_v14  ;;  %v414_v25 = vld [vmem:[%s2724_s12 + $0x60] sm:$0xff]  ;;  %v415_v26 = vld [vmem:[%s2724_s12 + $0x68] sm:$0xff]  ;;  %v416_v27 = vld [vmem:[%s2724_s12 + $0x70] sm:$0xff] }
  0x28   : > { %2179 = vmatprep.mubr.msk.f32.mxu0 %vm426_vm3, %v404_v15  ;;  %v417_v28 = vld [vmem:[%s2724_s12 + $0x78] sm:$0xff]  ;;  %v418_v29 = vld [vmem:[%s2724_s12 + $0x80] sm:$0xff]  ;;  %v419_v30 = vld [vmem:[%s2724_s12 + $0x88] sm:$0xff] }
  0x29   : > { %v420_v31 = vld [vmem:[%s2724_s12 + $0x90] sm:$0xff]  ;;  %v421_v32 = vld [vmem:[%s2724_s12 + $0x98] sm:$0xff]  ;;  %s2781_s12 = sshll.u32 %s2536_s16, 3 }
  0x2a   : > { %p390_p13 = scmp.lt.s32.totalorder %s2781_s12, 15 }
  0x2b   : > { %2180 = vmatmul.mubr.msk.f32.gmra.mrb[2].mxu0 %vm426_vm3, %v405_v16 }
  0x2c   : > { %2182 = vmatprep.mubr.msk.f32.mxu0 %vm426_vm3, %v406_v17  ;;  %s391_s21 = scalar_select %p390_p13, %s2781_s12, 15 }
  0x2e   : > { %s2009_s25 = sshll.u32 %s391_s21, 2 }
  0x2f   : > { %2183 = vmatmul.mubr.msk.f32.gmra.mrb[4].mxu0 %vm426_vm3, %v407_v18  ;;  %s394_s28 = sadd.s32 %s2010_s22, %s2009_s25  ;;  %s2059_s22 = sadd.s32 4294967295, %s2781_s12 }
  0x30   : > { %2185 = vmatprep.mubr.msk.f32.mxu0 %vm426_vm3, %v408_v19  ;;  %s2011_s29 = sshll.u32 %s394_s28, 3 }
  0x31   : > { %s2801_s21 = scalar_lea.vmem %s3615_s9, %s2011_s29  ;;  %s2083_s29 = sshll.u32 %s2536_s16, 4 }
  0x32   : > { %s1878_s12 = sadd.s32 %s2083_s29, %s2078_s23 }
  0x33   : > { %2186 = vmatmul.mubr.msk.f32.gmra.mrb[6].mxu0 %vm426_vm3, %v409_v20  ;;  %s2079_s27 = sshll.u32 %s1878_s12, 7 }
  0x34   : > { %2188 = vmatprep.mubr.msk.f32.mxu0 %vm426_vm3, %v410_v21  ;;  %s3544_s1 = scalar_lea.hbm %s3616_s10, %s2079_s27 }
  0x37   : > { %2189 = vmatmul.mubr.msk.f32.gmra.mrb[8].mxu0 %vm426_vm3, %v411_v22 }
  0x38   : > { %2191 = vmatprep.mubr.msk.f32.mxu0 %vm426_vm3, %v412_v23 }
  0x3b   : > { %2192 = vmatmul.mubr.msk.f32.gmra.mrb[10].mxu0 %vm426_vm3, %v413_v24 }
  0x3c   : > { %2194 = vmatprep.mubr.msk.f32.mxu0 %vm426_vm3, %v414_v25 }
  0x3f   : > { %2195 = vmatmul.mubr.msk.f32.gmra.mrb[12].mxu0 %vm426_vm3, %v415_v26 }
  0x40   : > { %2197 = vmatprep.mubr.msk.f32.mxu0 %vm426_vm3, %v416_v27 }
  0x43   : > { %2198 = vmatmul.mubr.msk.f32.gmra.mrb[14].mxu0 %vm426_vm3, %v417_v28 }
  0x44   : > { %2200 = vmatprep.mubr.msk.f32.mxu0 %vm426_vm3, %v418_v29 }
  0x47   : > { %2201 = vmatmul.mubr.msk.f32.gmra.mrb[16].mxu0 %vm426_vm3, %v419_v30 }
  0x48   : > { %2203 = vmatprep.mubr.msk.f32.mxu0 %vm426_vm3, %v420_v31 }
  0x4b   : > { %2204 = vmatmul.mubr.msk.f32.gmra.mrb[18].mxu0 %vm426_vm3, %v421_v32 }
  0xfa   : > { %v2178_v40 = vpop.f32.mrb[0].mxu0 }
  0xfb   : > { %v664_v42 = vmul.f32 %v2178_v40, %v2789_v39  ;;  %v557_v43 = vpop.f32.mrb[1].mxu0 }
  0xfc   : > { %v663_v44 = vmul.f32 %v2789_v39, %v557_v43 }
  0xfd   : > { %v691_v45 = vadd.f32 %v2794_v41, %v664_v42 }
  0xfe   : > { %v2181_v46 = vpop.f32.mrb[2].mxu0  ;;  %v690_v47 = vadd.f32 %v2794_v41, %v663_v44 }
  0xff   : > { %v666_v48 = vmul.f32 %v2181_v46, %v2789_v39  ;;  %1136 = vst.msk [vmem:[%s2801_s21 + $0x18] sm:$0xff] %vm738_vm4, %v2181_v46  ;;  %v567_v49 = vpop.f32.mrb[3].mxu0  ;;  %v711_v52 = vmax.f32 %v691_v45, 0.0 }
 0x100   : > { %v665_v50 = vmul.f32 %v2789_v39, %v567_v49  ;;  %1135 = vst.msk [vmem:[%s2801_s21 + $0x8] sm:$0xff] %vm738_vm4, %v567_v49  ;;  %v710_v51 = vmax.f32 %v690_v47, 0.0 }
 0x101   : > { %v693_v53 = vadd.f32 %v2794_v41, %v666_v48 }
 0x102   : > { %v692_v54 = vadd.f32 %v2794_v41, %v665_v50  ;;  %v2184_v55 = vpop.f32.mrb[4].mxu0  ;;  %2222 = vmatprep.mubr.msk.f32.mxu1 %vm738_vm4, %v710_v51 }
 0x103   : > { %v668_v56 = vmul.f32 %v2184_v55, %v2789_v39  ;;  %1138 = vst.msk [vmem:[%s2801_s21 + $0x38] sm:$0xff] %vm738_vm4, %v2184_v55  ;;  %v577_v57 = vpop.f32.mrb[5].mxu0  ;;  %2223 = vmatmul.mubr.msk.f32.vlgmr.msra.gmra.mrb[0].mxu1 %vm738_vm4, %v711_v52  ;;  %v713_v60 = vmax.f32 %v693_v53, 0.0 }
 0x104   : > { %v712_v58 = vmax.f32 %v692_v54, 0.0  ;;  %v667_v59 = vmul.f32 %v2789_v39, %v577_v57  ;;  %1137 = vst.msk [vmem:[%s2801_s21 + $0x28] sm:$0xff] %vm738_vm4, %v577_v57 }
 0x105   : > { %v695_v61 = vadd.f32 %v2794_v41, %v668_v56 }
 0x106   : > { %v694_v62 = vadd.f32 %v2794_v41, %v667_v59  ;;  %v2187_v63 = vpop.f32.mrb[6].mxu0  ;;  %2225 = vmatprep.mubr.msk.f32.mxu1 %vm738_vm4, %v712_v58  ;;  %v1672_v59 = vld [vmem:[%s3614_s8] sm:$0xff] }
 0x107   : > { %v670_v0 = vmul.f32 %v2187_v63, %v2789_v39  ;;  %1140 = vst.msk [vmem:[%s2801_s21 + $0x58] sm:$0xff] %vm738_vm4, %v2187_v63  ;;  %v587_v1 = vpop.f32.mrb[7].mxu0  ;;  %2226 = vmatmul.mubr.msk.f32.gmra.mrb[2].mxu1 %vm738_vm4, %v713_v60  ;;  %v715_v4 = vmax.f32 %v695_v61, 0.0  ;;  %v1675_v61 = vld [vmem:[%s3614_s8 + $0x18] sm:$0xff]  ;;  %v2555_v63 = vmov 0.0  }
 0x108   : > { %v714_v2 = vmax.f32 %v694_v62, 0.0  ;;  %v669_v3 = vmul.f32 %v2789_v39, %v587_v1  ;;  %1139 = vst.msk [vmem:[%s2801_s21 + $0x48] sm:$0xff] %vm738_vm4, %v587_v1  ;;  %1151 = vst [vmem:[#allocation2] sm:$0xff] %v2555_v63  ;;  %v1677_v1 = vld [vmem:[%s3614_s8 + $0x28] sm:$0xff] }
 0x109   : > { %v697_v5 = vadd.f32 %v2794_v41, %v670_v0  ;;  %1152 = vst [vmem:[#allocation2 + $0x20] sm:$0xff] %v2555_v63  ;;  %1153 = vst [vmem:[#allocation2 + $0x40] sm:$0xff] %v2555_v63  ;;  %v1676_v0 = vld [vmem:[%s3614_s8 + $0x20] sm:$0xff] }
 0x10a   : > { %v696_v6 = vadd.f32 %v2794_v41, %v669_v3  ;;  %v2190_v7 = vpop.f32.mrb[8].mxu0  ;;  %2228 = vmatprep.mubr.msk.f32.mxu1 %vm738_vm4, %v714_v2  ;;  %1154 = vst [vmem:[#allocation2 + $0x60] sm:$0xff] %v2555_v63  ;;  %1155 = vst [vmem:[#allocation2 + $0x80] sm:$0xff] %v2555_v63  ;;  %v2342_v2 = vpack.c.bf16 %v1677_v1, %v1676_v0  ;;  %v1678_v3 = vld [vmem:[%s3614_s8 + $0x30] sm:$0xff]  ;;  %v3028_v0 = vld [vmem:[%s3613_s7 + $0x2] ss:$0 sm:$0xff] }
 0x10b   : > { %v672_v8 = vmul.f32 %v2190_v7, %v2789_v39  ;;  %1142 = vst.msk [vmem:[%s2801_s21 + $0x78] sm:$0xff] %vm738_vm4, %v2190_v7  ;;  %v597_v9 = vpop.f32.mrb[9].mxu0  ;;  %2229 = vmatmul.mubr.msk.f32.gmra.mrb[4].mxu1 %vm738_vm4, %v715_v4  ;;  %v717_v12 = vmax.f32 %v697_v5, 0.0  ;;  %1156 = vst [vmem:[#allocation2 + $0xa0] sm:$0xff] %v2555_v63  ;;  %v1679_v4 = vld [vmem:[%s3614_s8 + $0x38] sm:$0xff]  ;;  %v1681_v7 = vld [vmem:[%s3614_s8 + $0x48] sm:$0xff] }
 0x10c   : > { %v716_v10 = vmax.f32 %v696_v6, 0.0  ;;  %v671_v11 = vmul.f32 %v2789_v39, %v597_v9  ;;  %1141 = vst.msk [vmem:[%s2801_s21 + $0x68] sm:$0xff] %vm738_vm4, %v597_v9  ;;  %1157 = vst [vmem:[#allocation2 + $0xc0] sm:$0xff] %v2555_v63  ;;  %v2346_v5 = vpack.c.bf16 %v1679_v4, %v1678_v3  ;;  %v1680_v6 = vld [vmem:[%s3614_s8 + $0x40] sm:$0xff]  ;;  %v1682_v9 = vld [vmem:[%s3614_s8 + $0x50] sm:$0xff] }
 0x10d   : > { %v699_v13 = vadd.f32 %v2794_v41, %v672_v8  ;;  %1158 = vst [vmem:[#allocation2 + $0xe0] sm:$0xff] %v2555_v63  ;;  %1159 = vst [vmem:[#allocation2 + $0x100] sm:$0xff] %v2555_v63  ;;  %v2350_v8 = vpack.c.bf16 %v1681_v7, %v1680_v6  ;;  %v3044_v7 = vld [vmem:[%s3613_s7 + $0x9] ss:$0 sm:$0xff] }
 0x10e   : > { %v698_v14 = vadd.f32 %v2794_v41, %v671_v11  ;;  %v2193_v15 = vpop.f32.mrb[10].mxu0  ;;  %2231 = vmatprep.mubr.msk.f32.mxu1 %vm738_vm4, %v716_v10  ;;  %1160 = vst [vmem:[#allocation2 + $0x120] sm:$0xff] %v2555_v63  ;;  %1161 = vst [vmem:[#allocation2 + $0x18] sm:$0xff] %v2555_v63  ;;  %v1683_v10 = vld [vmem:[%s3614_s8 + $0x58] sm:$0xff] }
 0x10f   : > { %v674_v16 = vmul.f32 %v2193_v15, %v2789_v39  ;;  %1144 = vst.msk [vmem:[%s2801_s21 + $0x98] sm:$0xff] %vm738_vm4, %v2193_v15  ;;  %v607_v17 = vpop.f32.mrb[11].mxu0  ;;  %2232 = vmatmul.mubr.msk.f32.gmra.mrb[6].mxu1 %vm738_vm4, %v717_v12  ;;  %v719_v20 = vmax.f32 %v699_v13, 0.0  ;;  %1162 = vst [vmem:[#allocation2 + $0x38] sm:$0xff] %v2555_v63  ;;  %v2354_v11 = vpack.c.bf16 %v1683_v10, %v1682_v9  ;;  %v1684_v12 = vld [vmem:[%s3614_s8 + $0x60] sm:$0xff]  ;;  %v1685_v13 = vld [vmem:[%s3614_s8 + $0x68] sm:$0xff] }
 0x110   : > { %v718_v18 = vmax.f32 %v698_v14, 0.0  ;;  %v673_v19 = vmul.f32 %v2789_v39, %v607_v17  ;;  %1143 = vst.msk [vmem:[%s2801_s21 + $0x88] sm:$0xff] %vm738_vm4, %v607_v17  ;;  %1163 = vst [vmem:[#allocation2 + $0x58] sm:$0xff] %v2555_v63  ;;  %v2358_v14 = vpack.c.bf16 %v1685_v13, %v1684_v12  ;;  %v1686_v15 = vld [vmem:[%s3614_s8 + $0x70] sm:$0xff] }
 0x111   : > { %v701_v21 = vadd.f32 %v2794_v41, %v674_v16  ;;  %1164 = vst [vmem:[#allocation2 + $0x78] sm:$0xff] %v2555_v63  ;;  %1165 = vst [vmem:[#allocation2 + $0x98] sm:$0xff] %v2555_v63  ;;  %v1687_v16 = vld [vmem:[%s3614_s8 + $0x78] sm:$0xff] }
 0x112   : > { %v700_v22 = vadd.f32 %v2794_v41, %v673_v19  ;;  %v2196_v23 = vpop.f32.mrb[12].mxu0  ;;  %2234 = vmatprep.mubr.msk.f32.mxu1 %vm738_vm4, %v718_v18  ;;  %1166 = vst [vmem:[#allocation2 + $0xb8] sm:$0xff] %v2555_v63  ;;  %1167 = vst [vmem:[#allocation2 + $0xd8] sm:$0xff] %v2555_v63  ;;  %v2362_v17 = vpack.c.bf16 %v1687_v16, %v1686_v15  ;;  %v2945_v18 = vld [vmem:[%s3611_s5] ss:$0 sm:$0xff]  ;;  %v2947_v19 = vstv %s2059_s22  ;;  %s2556_s22 = smov [#allocation3]  }
 0x113   : > { %v676_v24 = vmul.f32 %v2196_v23, %v2789_v39  ;;  %1146 = vst.msk [vmem:[%s2801_s21 + $0xb8] sm:$0xff] %vm738_vm4, %v2196_v23  ;;  %v617_v25 = vpop.f32.mrb[13].mxu0  ;;  %2235 = vmatmul.mubr.msk.f32.gmra.mrb[8].mxu1 %vm738_vm4, %v719_v20  ;;  %v721_v28 = vmax.f32 %v701_v21, 0.0  ;;  %1168 = vst [vmem:[#allocation2 + $0xf8] sm:$0xff] %v2555_v63  ;;  %v2952_v21 = vld [vmem:[%s3612_s6] ss:$0 sm:$0xff] }
 0x114   : > { %v720_v26 = vmax.f32 %v700_v22, 0.0  ;;  %v675_v27 = vmul.f32 %v2789_v39, %v617_v25  ;;  %1145 = vst.msk [vmem:[%s2801_s21 + $0xa8] sm:$0xff] %vm738_vm4, %v617_v25  ;;  %1169 = vst [vmem:[#allocation2 + $0x118] sm:$0xff] %v2555_v63  ;;  %v1040_v22 = vadd.s32 1, %v2947_v19  ;;  %vm1049_vm5 = vcmp.ge.s32.totalorder %v2947_v19, 0 }
 0x115   : > { %v703_v29 = vadd.f32 %v2794_v41, %v676_v24  ;;  %1170 = vst [vmem:[#allocation2 + $0x138] sm:$0xff] %v2555_v63  ;;  %vm1059_vm6 = vcmp.lt.s32.totalorder %v2947_v19, 16  ;;  %v3031_v1 = vadd.s32 9, %v2947_v19 }
 0x116   : > { %v702_v30 = vadd.f32 %v2794_v41, %v675_v27  ;;  %v2199_v31 = vpop.f32.mrb[14].mxu0  ;;  %2237 = vmatprep.mubr.msk.f32.mxu1 %vm738_vm4, %v720_v26  ;;  %vm2960_vm7 = vmand %vm1049_vm5, %vm1059_vm6  ;;  %vm1050_vm8 = vcmp.ge.s32.totalorder %v1040_v22, 0  ;;  %vm1060_vm9 = vcmp.lt.s32.totalorder %v1040_v22, 16 }
 0x117   : > { %v678_v32 = vmul.f32 %v2199_v31, %v2789_v39  ;;  %1148 = vst.msk [vmem:[%s2801_s21 + $0xd8] sm:$0xff] %vm738_vm4, %v2199_v31  ;;  %v627_v33 = vpop.f32.mrb[15].mxu0  ;;  %2238 = vmatmul.mubr.msk.f32.gmra.mrb[10].mxu1 %vm738_vm4, %v721_v28  ;;  %v723_v36 = vmax.f32 %v703_v29, 0.0  ;;  %vm2977_vm10 = vmand %vm1050_vm8, %vm1060_vm9 }
 0x118   : > { %v722_v34 = vmax.f32 %v702_v30, 0.0  ;;  %v677_v35 = vmul.f32 %v2789_v39, %v627_v33  ;;  %1147 = vst.msk [vmem:[%s2801_s21 + $0xc8] sm:$0xff] %vm738_vm4, %v627_v33  ;;  %v1041_v30 = vadd.s32 2, %v2947_v19 }
 0x119   : > { %v705_v37 = vadd.f32 %v2794_v41, %v678_v32 }
 0x11a   : > { %v704_v38 = vadd.f32 %v2794_v41, %v677_v35  ;;  %v2202_v40 = vpop.f32.mrb[16].mxu0  ;;  %2240 = vmatprep.mubr.msk.f32.mxu1 %vm738_vm4, %v722_v34  ;;  %v1042_v34 = vadd.s32 3, %v2947_v19  ;;  %vm1051_vm11 = vcmp.ge.s32.totalorder %v1041_v30, 0  ;;  %vm1061_vm12 = vcmp.lt.s32.totalorder %v1041_v30, 16 }
 0x11b   : > { %v680_v42 = vmul.f32 %v2202_v40, %v2789_v39  ;;  %1150 = vst.msk [vmem:[%s2801_s21 + $0xf8] sm:$0xff] %vm738_vm4, %v2202_v40  ;;  %v637_v43 = vpop.f32.mrb[17].mxu0  ;;  %2241 = vmatmul.mubr.msk.f32.gmra.mrb[12].mxu1 %vm738_vm4, %v723_v36  ;;  %v725_v46 = vmax.f32 %v705_v37, 0.0  ;;  %v2970_v37 = vadd.s32 4, %v2947_v19  ;;  %vm3010_vm1 = vmand %vm1051_vm11, %vm1061_vm12 }
 0x11c   : > { %v724_v44 = vmax.f32 %v704_v38, 0.0  ;;  %v679_v45 = vmul.f32 %v2789_v39, %v637_v43  ;;  %1149 = vst.msk [vmem:[%s2801_s21 + $0xe8] sm:$0xff] %vm738_vm4, %v637_v43  ;;  %vm1052_vm13 = vcmp.ge.s32.totalorder %v1042_v34, 0  ;;  %vm1062_vm14 = vcmp.lt.s32.totalorder %v1042_v34, 16 }
 0x11d   : > { %v707_v47 = vadd.f32 %v2794_v41, %v680_v42  ;;  %vm1053_vm15 = vcmp.ge.s32.totalorder %v2970_v37, 0  ;;  %vm1063_vm0 = vcmp.lt.s32.totalorder %v2970_v37, 16 }
 0x11e   : > { %v706_v48 = vadd.f32 %v2794_v41, %v679_v45  ;;  %v2205_v49 = vpop.f32.mrb[18].mxu0  ;;  %2243 = vmatprep.mubr.msk.f32.mxu1 %vm738_vm4, %v724_v44 }
 0x11f   : > { %v682_v50 = vmul.f32 %v2205_v49, %v2789_v39  ;;  %v647_v51 = vpop.f32.mrb[19].mxu0  ;;  %2244 = vmatmul.mubr.msk.f32.gmra.mrb[14].mxu1 %vm738_vm4, %v725_v46  ;;  %v727_v54 = vmax.f32 %v707_v47, 0.0  ;;  %v2983_v46 = vadd.s32 5, %v2947_v19 }
 0x120   : > { %v726_v52 = vmax.f32 %v706_v48, 0.0  ;;  %v681_v53 = vmul.f32 %v2789_v39, %v647_v51  ;;  %v1673_v39 = vld [vmem:[%s3614_s8 + $0x8] sm:$0xff] }
 0x121   : > { %v709_v55 = vadd.f32 %v2794_v41, %v682_v50  ;;  %v2334_v60 = vpack.c.bf16 %v1673_v39, %v1672_v59  ;;  %vm1054_vm2 = vcmp.ge.s32.totalorder %v2983_v46, 0  ;;  %vm1064_vm3 = vcmp.lt.s32.totalorder %v2983_v46, 16 }
 0x122   : > { %v708_v56 = vadd.f32 %v2794_v41, %v681_v53  ;;  %2246 = vmatprep.mubr.msk.f32.mxu1 %vm738_vm4, %v726_v52  ;;  %v1674_v41 = vld [vmem:[%s3614_s8 + $0x10] sm:$0xff]  ;;  %v2991_v52 = vld [vmem:[%s3613_s7 + $0x1] ss:$0 sm:$0xff] }
 0x123   : > { %v729_v57 = vmax.f32 %v709_v55, 0.0  ;;  %2247 = vmatmul.mubr.msk.f32.gmra.mrb[16].mxu1 %vm738_vm4, %v727_v54  ;;  %2335 = vmatprep.subr.bf16.mxu0 %v2334_v60  ;;  %v2338_v62 = vpack.c.bf16 %v1675_v61, %v1674_v41  ;;  %v2998_v55 = vadd.s32 6, %v2947_v19  ;;  %v3021_v41 = vadd.s32 8, %v2947_v19 }
 0x124   : > { %v728_v58 = vmax.f32 %v708_v56, 0.0  ;;  %2366 = vmatprep.subr.bf16.mxu1 %v2334_v60  ;;  %2337 = vmatpush3.bf16.msra.mxu0 %v2334_v60  ;;  %v3003_v56 = vld [vmem:[%s3613_s7 + $0x5] ss:$0 sm:$0xff] }
 0x125   : > { %2374 = vmatpush3.bf16.msra.mxu1 %v2334_v60  ;;  %2339 = vmatprep.subr.bf16.mxu0 %v2338_v62  ;;  %v3018_v60 = vadd.s32 7, %v2947_v19  ;;  %vm1055_vm5 = vcmp.ge.s32.totalorder %v2998_v55, 0  ;;  %vm1065_vm6 = vcmp.lt.s32.totalorder %v2998_v55, 16  ;;  %vm1057_vm11 = vcmp.ge.s32.totalorder %v3021_v41, 0 }
 0x126   : > { %2249 = vmatprep.mubr.msk.f32.mxu1 %vm738_vm4, %v728_v58  ;;  %2367 = vmatprep.subr.bf16.mxu1 %v2338_v62  ;;  %vm1067_vm12 = vcmp.lt.s32.totalorder %v3021_v41, 16 }
 0x127   : > { %2250 = vmatmul.mubr.msk.f32.gmra.mrb[18].mxu1 %vm738_vm4, %v729_v57  ;;  %vm3056_vm4 = vmand %vm1052_vm13, %vm1062_vm14  ;;  %vm1056_vm8 = vcmp.ge.s32.totalorder %v3018_v60, 0  ;;  %vm1066_vm9 = vcmp.lt.s32.totalorder %v3018_v60, 16  ;;  %vm1058_vm14 = vcmp.ge.s32.totalorder %v3031_v1, 0 }
 0x128   : > { %2341 = vmatpush3.bf16.msra.mxu0 %v2338_v62  ;;  %vm3216_vm13 = vmand %vm1055_vm5, %vm1065_vm6 }
 0x129   : > { %2375 = vmatpush3.bf16.msra.mxu1 %v2338_v62  ;;  %2343 = vmatprep.subr.bf16.mxu0 %v2342_v2 }
 0x12a   : > { %2368 = vmatprep.subr.bf16.mxu1 %v2342_v2 }
 0x12c   : > { %2345 = vmatpush3.bf16.msra.mxu0 %v2342_v2 }
 0x12d   : > { %2376 = vmatpush3.bf16.msra.mxu1 %v2342_v2  ;;  %2347 = vmatprep.subr.bf16.mxu0 %v2346_v5 }
 0x12e   : > { %2369 = vmatprep.subr.bf16.mxu1 %v2346_v5 }
 0x130   : > { %2349 = vmatpush3.bf16.msra.mxu0 %v2346_v5 }
 0x131   : > { %2377 = vmatpush3.bf16.msra.mxu1 %v2346_v5  ;;  %2351 = vmatprep.subr.bf16.mxu0 %v2350_v8  ;;  %v3038_v5 = vld [vmem:[%s3613_s7] ss:$0 sm:$0xff] }
 0x132   : > { %2370 = vmatprep.subr.bf16.mxu1 %v2350_v8 }
 0x134   : > { %2353 = vmatpush3.bf16.msra.mxu0 %v2350_v8 }
 0x135   : > { %2378 = vmatpush3.bf16.msra.mxu1 %v2350_v8  ;;  %2355 = vmatprep.subr.bf16.mxu0 %v2354_v11 }
 0x136   : > { %2371 = vmatprep.subr.bf16.mxu1 %v2354_v11 }
 0x138   : > { %2357 = vmatpush3.bf16.msra.mxu0 %v2354_v11 }
 0x139   : > { %2379 = vmatpush3.bf16.msra.mxu1 %v2354_v11  ;;  %2359 = vmatprep.subr.bf16.mxu0 %v2358_v14 }
 0x13a   : > { %2372 = vmatprep.subr.bf16.mxu1 %v2358_v14 }
 0x13c   : > { %2361 = vmatpush3.bf16.msra.mxu0 %v2358_v14 }
 0x13d   : > { %2380 = vmatpush3.bf16.msra.mxu1 %v2358_v14  ;;  %2363 = vmatprep.subr.bf16.mxu0 %v2362_v17 }
 0x13e   : > { %2373 = vmatprep.subr.bf16.mxu1 %v2362_v17 }
 0x140   : > { %2365 = vmatpush3.bf16.msra.mxu0 %v2362_v17 }
 0x141   : > { %2381 = vmatpush3.bf16.msra.mxu1 %v2362_v17 }
 0x1d6   : > { %v2224_v20 = vpop.f32.mrb[0].mxu1 }
 0x1d7   : > { %v972_v23 = vmul.f32 %v2224_v20, %v2945_v18  ;;  %v865_v24 = vpop.f32.mrb[1].mxu1 }
 0x1d8   : > { %v971_v25 = vmul.f32 %v2945_v18, %v865_v24 }
 0x1d9   : > { %v999_v26 = vadd.f32 %v2952_v21, %v972_v23 }
 0x1da   : > { %v998_v28 = vadd.f32 %v2952_v21, %v971_v25  ;;  %v2227_v29 = vpop.f32.mrb[2].mxu1 }
 0x1db   : > { %v1019_v31 = vmax.f32 %v999_v26, 0.0  ;;  %v974_v32 = vmul.f32 %v2227_v29, %v2945_v18  ;;  %v875_v33 = vpop.f32.mrb[3].mxu1 }
 0x1dc   : > { %v1018_v35 = vmax.f32 %v998_v28, 0.0  ;;  %v973_v36 = vmul.f32 %v2945_v18, %v875_v33  ;;  %v3094_v33 = vld [vmem:[%s3613_s7 + $0x4] ss:$0 sm:$0xff] }
 0x1dd   : > { %v1100_v38 = vsel %vm2960_vm7, %v1019_v31, 0.0  ;;  %v1001_v40 = vadd.f32 %v2952_v21, %v974_v32 }
 0x1de   : > { %1172 = vst [vmem:[#allocation2 + $0x10] sm:$0xff] %v1100_v38  ;;  %v1099_v42 = vsel %vm2960_vm7, %v1018_v35, 0.0  ;;  %v1000_v44 = vadd.f32 %v2952_v21, %v973_v36  ;;  %v2230_v45 = vpop.f32.mrb[4].mxu1  ;;  %v1266_v2 = vmul.f32 %v2991_v52, %v1100_v38  ;;  %vm3124_vm7 = vmand %vm1053_vm15, %vm1063_vm0  ;;  %vm1068_vm15 = vcmp.lt.s32.totalorder %v3031_v1, 16 }
 0x1df   : > { %1171 = vst [vmem:[#allocation2 + $0x8] sm:$0xff] %v1099_v42  ;;  %v1021_v47 = vmax.f32 %v1001_v40, 0.0  ;;  %v976_v48 = vmul.f32 %v2230_v45, %v2945_v18  ;;  %v885_v49 = vpop.f32.mrb[5].mxu1  ;;  %v1265_v6 = vmul.f32 %v2991_v52, %v1099_v42  ;;  %v3105_v40 = vld [vmem:[%s3613_s7 + $0x6] ss:$0 sm:$0xff]  ;;  %vm3252_vm0 = vmand %vm1056_vm8, %vm1066_vm9 }
 0x1e0   : > { %v1020_v50 = vmax.f32 %v1000_v44, 0.0  ;;  %v975_v51 = vmul.f32 %v2945_v18, %v885_v49 }
 0x1e1   : > { %v1102_v53 = vsel %vm2977_vm10, %v1021_v47, 0.0  ;;  %v1003_v54 = vadd.f32 %v2952_v21, %v976_v48 }
 0x1e2   : > { %1120 = vst [vmem:[%s2801_s21 + $0x10] sm:$0xff] %v1102_v53  ;;  %1174 = vst [vmem:[#allocation2 + $0x30] sm:$0xff] %v1102_v53  ;;  %v1101_v57 = vsel %vm2977_vm10, %v1020_v50, 0.0  ;;  %v1002_v59 = vadd.f32 %v2952_v21, %v975_v51  ;;  %v2233_v39 = vpop.f32.mrb[6].mxu1  ;;  %v3047_v8 = vmul.f32 %v3003_v56, %v1102_v53  ;;  %v3064_v14 = vmul.f32 %v2991_v52, %v1102_v53 }
 0x1e3   : > { %1119 = vst [vmem:[%s2801_s21] sm:$0xff] %v1101_v57  ;;  %1173 = vst [vmem:[#allocation2 + $0x28] sm:$0xff] %v1101_v57  ;;  %v1023_v61 = vmax.f32 %v1003_v54, 0.0  ;;  %v978_v62 = vmul.f32 %v2233_v39, %v2945_v18  ;;  %v895_v63 = vpop.f32.mrb[7].mxu1  ;;  %v3061_v12 = vmul.f32 %v3003_v56, %v1101_v57  ;;  %v3076_v24 = vmul.f32 %v2991_v52, %v1101_v57 }
 0x1e4   : > { %v1022_v3 = vmax.f32 %v1002_v59, 0.0  ;;  %v977_v4 = vmul.f32 %v2945_v18, %v895_v63  ;;  %v3146_v63 = vld [vmem:[%s3613_s7 + $0x8] ss:$0 sm:$0xff]  ;;  %vm3159_vm10 = vmand %vm1054_vm2, %vm1064_vm3  ;;  %vm1833_vm3 = vcmask 261120  }
 0x1e5   : > { %v3051_v9 = vsel %vm3010_vm1, %v1023_v61, 0.0  ;;  %v1005_v10 = vadd.f32 %v2952_v21, %v978_v62  ;;  %v1298_v13 = vld [vmem:[#allocation2 + $0x11] sm:$0xff]  ;;  %vm3325_vm2 = vmand %vm1058_vm14, %vm1068_vm15 }
 0x1e6   : > { %1122 = vst [vmem:[%s2801_s21 + $0x30] sm:$0xff] %v3051_v9  ;;  %1176 = vst [vmem:[#allocation2 + $0x50] sm:$0xff] %v3051_v9  ;;  %v3071_v15 = vsel %vm3010_vm1, %v1022_v3, 0.0  ;;  %v1004_v16 = vadd.f32 %v2952_v21, %v977_v4  ;;  %v2236_v17 = vpop.f32.mrb[8].mxu1  ;;  %v1191_v19 = vld [vmem:[#allocation2 + $0x7] sm:$0xff]  ;;  %v1192_v22 = vld [vmem:[#allocation2 + $0xf] sm:$0xff]  ;;  %v1319_v23 = vmul.f32 %v3028_v0, %v1298_v13  ;;  %v3087_v29 = vmul.f32 %v3044_v7, %v3051_v9 }
 0x1e7   : > { %v1297_v20 = vld [vmem:[#allocation2 + $0x9] sm:$0xff]  ;;  %1121 = vst [vmem:[%s2801_s21 + $0x20] sm:$0xff] %v3071_v15  ;;  %1175 = vst [vmem:[#allocation2 + $0x48] sm:$0xff] %v3071_v15  ;;  %v1025_v25 = vmax.f32 %v1005_v10, 0.0  ;;  %v980_v26 = vmul.f32 %v2236_v17, %v2945_v18  ;;  %v905_v27 = vpop.f32.mrb[9].mxu1  ;;  %v1212_v28 = vmul.f32 %v3038_v5, %v1191_v19  ;;  %v1213_v34 = vmul.f32 %v3038_v5, %v1192_v22 }
 0x1e8   : > { %v1024_v30 = vmax.f32 %v1004_v16, 0.0  ;;  %v979_v31 = vmul.f32 %v2945_v18, %v905_v27  ;;  %v1318_v32 = vmul.f32 %v3028_v0, %v1297_v20  ;;  %v3109_v42 = vmul.f32 %v3044_v7, %v3071_v15  ;;  %v3166_v13 = vld [vmem:[%s3613_s7 + $0xa] ss:$0 sm:$0xff]  ;;  %vm3288_vm1 = vmand %vm1057_vm11, %vm1067_vm12 }
 0x1e9   : > { %v3099_v35 = vsel %vm3056_vm4, %v1025_v25, 0.0  ;;  %v1007_v36 = vadd.f32 %v2952_v21, %v980_v26  ;;  %v1281_v38 = vadd.f32 %v1265_v6, %v1212_v28  ;;  %v3111_v43 = vld [vmem:[#allocation2 + $0x31] sm:$0xff]  ;;  %v1282_v50 = vadd.f32 %v1266_v2, %v1213_v34 }
 0x1ea   : > { %1124 = vst [vmem:[%s2801_s21 + $0x50] sm:$0xff] %v3099_v35  ;;  %1178 = vst [vmem:[#allocation2 + $0x70] sm:$0xff] %v3099_v35  ;;  %v3118_v44 = vsel %vm3056_vm4, %v1024_v30, 0.0  ;;  %v1006_v47 = vadd.f32 %v2952_v21, %v979_v31  ;;  %v2239_v48 = vpop.f32.mrb[10].mxu1  ;;  %v1351_v49 = vld [vmem:[#allocation2 + $0x27] sm:$0xff]  ;;  %v3129_v51 = vld [vmem:[#allocation2 + $0x2f] sm:$0xff]  ;;  %v3133_v53 = vmul.f32 %v3003_v56, %v3071_v15  ;;  %v1480_v3 = vmul.f32 %v3105_v40, %v3111_v43 }
 0x1eb   : > { %1123 = vst [vmem:[%s2801_s21 + $0x40] sm:$0xff] %v3118_v44  ;;  %1177 = vst [vmem:[#allocation2 + $0x68] sm:$0xff] %v3118_v44  ;;  %v1027_v37 = vmax.f32 %v1007_v36, 0.0  ;;  %v982_v54 = vmul.f32 %v2239_v48, %v2945_v18  ;;  %v915_v57 = vpop.f32.mrb[11].mxu1  ;;  %v1334_v58 = vadd.f32 %v1318_v32, %v1281_v38  ;;  %v1373_v59 = vmul.f32 %v3094_v33, %v1351_v49  ;;  %v1458_v39 = vld [vmem:[#allocation2 + $0x29] sm:$0xff] }
 0x1ec   : > { %v1026_v61 = vmax.f32 %v1006_v47, 0.0  ;;  %v981_v62 = vmul.f32 %v2945_v18, %v915_v57  ;;  %v1335_v2 = vadd.f32 %v1319_v23, %v1282_v50  ;;  %v1374_v16 = vmul.f32 %v3094_v33, %v3129_v51 }
 0x1ed   : > { %v3152_v4 = vsel %vm3124_vm7, %v1027_v37, 0.0  ;;  %v1009_v6 = vadd.f32 %v2952_v21, %v982_v54  ;;  %v1389_v11 = vadd.f32 %v1373_v59, %v1334_v58  ;;  %v1479_v20 = vmul.f32 %v3105_v40, %v1458_v39 }
 0x1ee   : > { %1126 = vst [vmem:[%s2801_s21 + $0x70] sm:$0xff] %v3152_v4  ;;  %1180 = vst [vmem:[#allocation2 + $0x90] sm:$0xff] %v3152_v4  ;;  %v3175_v46 = vsel %vm3124_vm7, %v1026_v61, 0.0  ;;  %v1008_v17 = vadd.f32 %v2952_v21, %v981_v62  ;;  %v2242_v19 = vpop.f32.mrb[12].mxu1  ;;  %v3179_v22 = vld [vmem:[#allocation2 + $0x47] sm:$0xff]  ;;  %v3183_v25 = vld [vmem:[#allocation2 + $0x4f] sm:$0xff]  ;;  %v1214_v26 = vmul.f32 %v3038_v5, %v1351_v49  ;;  %v1390_v45 = vadd.f32 %v1374_v16, %v1335_v2 }
 0x1ef   : > { %v3181_v23 = vld [vmem:[#allocation2 + $0x49] sm:$0xff]  ;;  %1125 = vst [vmem:[%s2801_s21 + $0x60] sm:$0xff] %v3175_v46  ;;  %1179 = vst [vmem:[#allocation2 + $0x88] sm:$0xff] %v3175_v46  ;;  %v1029_v27 = vmax.f32 %v1009_v6, 0.0  ;;  %v984_v28 = vmul.f32 %v2242_v19, %v2945_v18  ;;  %v925_v30 = vpop.f32.mrb[13].mxu1  ;;  %v1442_v31 = vadd.f32 %v3061_v12, %v1389_v11  ;;  %v1534_v32 = vmul.f32 %v3146_v63, %v3179_v22  ;;  %v3229_v6 = vld [vmem:[#allocation2 + $0x51] sm:$0xff] }
 0x1f0   : > { %v1028_v34 = vmax.f32 %v1008_v17, 0.0  ;;  %v983_v36 = vmul.f32 %v2945_v18, %v925_v30  ;;  %v1640_v38 = vmul.f32 %v3166_v13, %v3181_v23  ;;  %v1535_v12 = vmul.f32 %v3146_v63, %v3183_v25 }
 0x1f1   : > { %v3200_v47 = vsel %vm3159_vm10, %v1029_v27, 0.0  ;;  %v1011_v48 = vadd.f32 %v2952_v21, %v984_v28  ;;  %v1495_v49 = vadd.f32 %v1479_v20, %v1442_v31  ;;  %v1443_v58 = vadd.f32 %v3047_v8, %v1390_v45 }
 0x1f2   : > { %1128 = vst [vmem:[%s2801_s21 + $0x90] sm:$0xff] %v3200_v47  ;;  %1182 = vst [vmem:[#allocation2 + $0xb0] sm:$0xff] %v3200_v47  ;;  %v3210_v50 = vsel %vm3159_vm10, %v1028_v34, 0.0  ;;  %v1010_v54 = vadd.f32 %v2952_v21, %v983_v36  ;;  %v2245_v57 = vpop.f32.mrb[14].mxu1  ;;  %v1283_v59 = vadd.f32 %v3076_v24, %v1214_v26  ;;  %v1320_v8 = vmul.f32 %v3028_v0, %v1458_v39  ;;  %v3259_v31 = vld [vmem:[#allocation2 + $0x67] sm:$0xff] }
 0x1f3   : > { %1127 = vst [vmem:[%s2801_s21 + $0x80] sm:$0xff] %v3210_v50  ;;  %1181 = vst [vmem:[#allocation2 + $0xa8] sm:$0xff] %v3210_v50  ;;  %v1031_v61 = vmax.f32 %v1011_v48, 0.0  ;;  %v986_v62 = vmul.f32 %v2245_v57, %v2945_v18  ;;  %v935_v55 = vpop.f32.mrb[15].mxu1  ;;  %v1550_v2 = vadd.f32 %v1534_v32, %v1495_v49  ;;  %v1496_v11 = vadd.f32 %v1480_v3, %v1443_v58 }
 0x1f4   : > { %v1030_v10 = vmax.f32 %v1010_v54, 0.0  ;;  %v985_v24 = vmul.f32 %v2945_v18, %v935_v55  ;;  %v1375_v16 = vmul.f32 %v3094_v33, %v3179_v22  ;;  %v1336_v26 = vadd.f32 %v1320_v8, %v1283_v59 }
 0x1f5   : > { %v3237_v17 = vsel %vm3216_vm13, %v1031_v61, 0.0  ;;  %v1013_v19 = vadd.f32 %v2952_v21, %v986_v62  ;;  %v1603_v20 = vadd.f32 %v3109_v42, %v1550_v2  ;;  %v1551_v28 = vadd.f32 %v1535_v12, %v1496_v11 }
 0x1f6   : > { %1130 = vst [vmem:[%s2801_s21 + $0xb0] sm:$0xff] %v3237_v17  ;;  %1184 = vst [vmem:[#allocation2 + $0xd0] sm:$0xff] %v3237_v17  ;;  %v3246_v39 = vsel %vm3216_vm13, %v1030_v10, 0.0  ;;  %v1012_v27 = vadd.f32 %v2952_v21, %v985_v24  ;;  %v2248_v42 = vpop.f32.mrb[16].mxu1  ;;  %v1641_v30 = vmul.f32 %v3166_v13, %v3229_v6  ;;  %v1391_v45 = vadd.f32 %v1375_v16, %v1336_v26 }
 0x1f7   : > { %1129 = vst [vmem:[%s2801_s21 + $0xa0] sm:$0xff] %v3246_v39  ;;  %1183 = vst [vmem:[#allocation2 + $0xc8] sm:$0xff] %v3246_v39  ;;  %v1033_v32 = vmax.f32 %v1013_v19, 0.0  ;;  %v988_v60 = vmul.f32 %v2248_v42, %v2945_v18  ;;  %v945_v34 = vpop.f32.mrb[17].mxu1  ;;  %v1656_v36 = vadd.f32 %v1640_v38, %v1603_v20  ;;  %v1604_v12 = vadd.f32 %v3087_v29, %v1551_v28  ;;  %v3302_v19 = vld [vmem:[#allocation2 + $0x69] sm:$0xff] }
 0x1f8   : > { %v1032_v48 = vmax.f32 %v1012_v27, 0.0  ;;  %v987_v49 = vmul.f32 %v2945_v18, %v945_v34  ;;  %v1481_v37 = vmul.f32 %v3105_v40, %v3181_v23  ;;  %v1444_v58 = vadd.f32 %v3133_v53, %v1391_v45 }
 0x1f9   : > { %v3271_v54 = vsel %vm3252_vm0, %v1033_v32, 0.0  ;;  %v1015_v57 = vadd.f32 %v2952_v21, %v988_v60  ;;  %2284 = vmatprep.mubr.f32.mxu0 %v1656_v36  ;;  %v1536_v38 = vmul.f32 %v3146_v63, %v3259_v31  ;;  %v1657_v62 = vadd.f32 %v1641_v30, %v1604_v12 }
 0x1fa   : > { %1132 = vst [vmem:[%s2801_s21 + $0xd0] sm:$0xff] %v3271_v54  ;;  %1186 = vst [vmem:[#allocation2 + $0xf0] sm:$0xff] %v3271_v54  ;;  %v3282_v29 = vsel %vm3252_vm0, %v1032_v48, 0.0  ;;  %v1014_v53 = vadd.f32 %v2952_v21, %v987_v49  ;;  %v2251_v61 = vpop.f32.mrb[18].mxu1  ;;  %v1589_v55 = vmul.f32 %v3044_v7, %v3118_v44  ;;  %v1497_v10 = vadd.f32 %v1481_v37, %v1444_v58  ;;  %v1622_v58 = vld [vmem:[#allocation2 + $0x71] sm:$0xff] }
 0x1fb   : > { %1131 = vst [vmem:[%s2801_s21 + $0xc0] sm:$0xff] %v3282_v29  ;;  %1185 = vst [vmem:[#allocation2 + $0xe8] sm:$0xff] %v3282_v29  ;;  %v1035_v2 = vmax.f32 %v1015_v57, 0.0  ;;  %v990_v8 = vmul.f32 %v2251_v61, %v2945_v18  ;;  %v955_v41 = vpop.f32.mrb[19].mxu1  ;;  %v1215_v24 = vmul.f32 %v3038_v5, %v3129_v51  ;;  %2285 = vmatmul.mubr.f32.vlgmr.msra.gmra.mrb[20].mxu0 %v1657_v62  ;;  %v1515_v57 = vld [vmem:[#allocation2 + $0x6f] sm:$0xff] }
 0x1fc   : > { %v1034_v11 = vmax.f32 %v1014_v53, 0.0  ;;  %v989_v16 = vmul.f32 %v2945_v18, %v955_v41  ;;  %v1321_v20 = vmul.f32 %v3028_v0, %v3111_v43  ;;  %v1376_v26 = vmul.f32 %v3094_v33, %v3183_v25  ;;  %v1516_v41 = vld [vmem:[#allocation2 + $0x87] sm:$0xff] }
 0x1fd   : > { %v3310_v3 = vsel %vm3288_vm1, %v1035_v2, 0.0  ;;  %v1017_v27 = vadd.f32 %v2952_v21, %v990_v8  ;;  %v1552_v51 = vadd.f32 %v1536_v38, %v1497_v10  ;;  %v1284_v42 = vadd.f32 %v3064_v14, %v1215_v24 }
 0x1fe   : > { %1134 = vst [vmem:[%s2801_s21 + $0xf0] sm:$0xff] %v3310_v3  ;;  %1188 = vst [vmem:[#allocation2 + $0x110] sm:$0xff] %v3310_v3  ;;  %v3319_v18 = vsel %vm3288_vm1, %v1034_v11, 0.0  ;;  %v1016_v28 = vadd.f32 %v2952_v21, %v989_v16  ;;  %v1642_v32 = vmul.f32 %v3166_v13, %v3302_v19  ;;  %v1429_v1 = vmul.f32 %v3003_v56, %v3051_v9 }
 0x1ff   : > { %1133 = vst [vmem:[%s2801_s21 + $0xe0] sm:$0xff] %v3319_v18  ;;  %1187 = vst [vmem:[#allocation2 + $0x108] sm:$0xff] %v3319_v18  ;;  %v1037_v14 = vmax.f32 %v1017_v27, 0.0  ;;  %v1605_v30 = vadd.f32 %v1589_v55, %v1552_v51  ;;  %v1337_v60 = vadd.f32 %v1321_v20, %v1284_v42  ;;  %v1216_v36 = vmul.f32 %v3038_v5, %v3179_v22  ;;  %v1623_v27 = vld [vmem:[#allocation2 + $0x89] sm:$0xff]  ;;  %s379_s21 = sand.u32 1, %s2528_s14  }
 0x200   : > { %v1036_v34 = vmax.f32 %v1016_v28, 0.0  ;;  %v1269_v49 = vmul.f32 %v2991_v52, %v3071_v15  ;;  %v1482_v37 = vmul.f32 %v3105_v40, %v3229_v6  ;;  %v1322_v59 = vmul.f32 %v3028_v0, %v3181_v23  ;;  %s2006_s25 = sshll.u32 %s379_s21, 7  ;;  %s3554_s16 = scalar_lea.sflag [#allocation4], %s379_s21 }
 0x201   : > { %v3341_v21 = vsel %vm3325_vm2, %v1037_v14, 0.0  ;;  %v1658_v45 = vadd.f32 %v1642_v32, %v1605_v30  ;;  %v1392_v48 = vadd.f32 %v1376_v26, %v1337_v60  ;;  %v1377_v15 = vmul.f32 %v3094_v33, %v3259_v31  ;;  %v1517_v60 = vld [vmem:[#allocation2 + $0x8f] sm:$0xff]  ;;  %s3508_s28 = scalar_lea.vmem [#allocation3], %s2006_s25  ;;  %s2462_s25 = sshll.u32 %s2556_s22, 4  ;;  %s2463_s25 = int_to_ptr.vmem [resolvable:$false] %s2462_s25 }
 0x202   : > { %1190 = vst [vmem:[#allocation2 + $0x130] sm:$0xff] %v3341_v21  ;;  %v3348_v12 = vsel %vm3325_vm2, %v1036_v34, 0.0  ;;  %v1285_v38 = vadd.f32 %v1269_v49, %v1216_v36  ;;  %v1217_v53 = vmul.f32 %v3038_v5, %v3183_v25  ;;  %v1270_v61 = vmul.f32 %v2991_v52, %v3051_v9  ;;  %s1881_s18 = sshll.u32 %s3508_s28, 4  ;;  %s2464_s29 = scalar_lea.vmem %s2463_s25, 4096  ;;  %s3546_s18 = int_to_ptr.vmem [resolvable:$true] %s1881_s18 }
 0x203   : > { %1189 = vst [vmem:[#allocation2 + $0x128] sm:$0xff] %v3348_v12  ;;  %2287 = vmatprep.mubr.f32.mxu0 %v1658_v45  ;;  %v1445_v22 = vadd.f32 %v1429_v1, %v1392_v48  ;;  %v1537_v55 = vmul.f32 %v3146_v63, %v1515_v57  ;;  %v1590_v2 = vmul.f32 %v3044_v7, %v3099_v35  ;;  %s2458_s17 = scalar_lea.vmem %s3546_s18, 2048  ;;  %p2465_p4 = scmp.lt.s32.totalorder %s3546_s18, %s2463_s25 }
 0x204   : > { %v1338_v8 = vadd.f32 %v1322_v59, %v1285_v38  ;;  %v1643_v10 = vmul.f32 %v3166_v13, %v1622_v58  ;;  %v1286_v23 = vadd.f32 %v1270_v61, %v1217_v53  ;;  %v1323_v24 = vmul.f32 %v3028_v0, %v3229_v6  ;;  %p2459_p0 = scmp.ne.s32.totalorder %s3546_s18, %s2458_s17  ;;  %p2466_p5 = scmp.lt.s32.totalorder %s2464_s29, %s2458_s17 }
 0x205   : > { %v1498_v62 = vadd.f32 %v1482_v37, %v1445_v22  ;;  %v1378_v11 = vmul.f32 %v3094_v33, %v1515_v57  ;;  %v1430_v9 = vmul.f32 %v3003_v56, %v3118_v44  ;;  %v1483_v20 = vmul.f32 %v3105_v40, %v3302_v19  ;;  %v1624_v37 = vld [vmem:[#allocation2 + $0x91] sm:$0xff] }
 0x206   : > { %v1393_v16 = vadd.f32 %v1377_v15, %v1338_v8  ;;  %v1538_v26 = vmul.f32 %v3146_v63, %v1516_v41  ;;  %v1339_v51 = vadd.f32 %v1323_v24, %v1286_v23  ;;  %v1218_v42 = vmul.f32 %v3038_v5, %v3259_v31  ;;  %p2460_p1 = pnand %p2459_p0, %p2665_p3  ;;  %p2467_p6 = por %p2466_p5, %p2465_p4 }
 0x207   : > { %v1553_v25 = vadd.f32 %v1537_v55, %v1498_v62  ;;  %v1271_v6 = vmul.f32 %v2991_v52, %v3118_v44  ;;  %v1591_v14 = vmul.f32 %v3044_v7, %v3175_v46  ;;  %v1431_v30 = vmul.f32 %v3003_v56, %v3099_v35 }
 0x208   : > { %v1446_v28 = vadd.f32 %v1430_v9, %v1393_v16  ;;  %v1394_v32 = vadd.f32 %v1378_v11, %v1339_v51  ;;  %v1324_v1 = vmul.f32 %v3028_v0, %v3302_v19  ;;  %v1379_v36 = vmul.f32 %v3094_v33, %v1516_v41  ;;  %v1625_v16 = vld [vmem:[#allocation2 + $0xa9] sm:$0xff]  ;;  %p2461_p2 = pneg %p2460_p1 }
 0x209   : > { %v1606_v43 = vadd.f32 %v1590_v2, %v1553_v25  ;;  %v1287_v34 = vadd.f32 %v1271_v6, %v1218_v42  ;;  %v1644_v44 = vmul.f32 %v3166_v13, %v1623_v27  ;;  %v1484_v48 = vmul.f32 %v3105_v40, %v1622_v58  ;;  %v1518_v2 = vld [vmem:[#allocation2 + $0xa7] sm:$0xff] }
 0x20a   : > { %v1499_v45 = vadd.f32 %v1483_v20, %v1446_v28  ;;  %v1447_v49 = vadd.f32 %v1431_v30, %v1394_v32  ;;  %v1219_v38 = vmul.f32 %v3038_v5, %v1515_v57  ;;  %v1272_v59 = vmul.f32 %v2991_v52, %v3099_v35  ;;  %v1519_v30 = vld [vmem:[#allocation2 + $0xaf] sm:$0xff]  ;;  %p2468_p7 = pnand %p2467_p6, %p2461_p2 }
 0x20b   : > { %v1659_v31 = vadd.f32 %v1643_v10, %v1606_v43  ;;  %v1340_v22 = vadd.f32 %v1324_v1, %v1287_v34  ;;  %v1539_v19 = vmul.f32 %v3146_v63, %v1517_v60  ;;  %v1432_v53 = vmul.f32 %v3003_v56, %v3175_v46 }
 0x20c   : > { %v1554_v15 = vadd.f32 %v1538_v26, %v1499_v45  ;;  %v1325_v61 = vmul.f32 %v3028_v0, %v1622_v58  ;;  %v1500_v62 = vadd.f32 %v1484_v48, %v1447_v49  ;;  %v1288_v8 = vadd.f32 %v1272_v59, %v1219_v38  ;;  %v1626_v48 = vld [vmem:[#allocation2 + $0xb1] sm:$0xff] }
 0x20d   : > { %2288 = vmatmul.mubr.f32.gmra.mrb[22].mxu0 %v1659_v31  ;;  %v1395_v55 = vadd.f32 %v1379_v36, %v1340_v22  ;;  %v1380_v10 = vmul.f32 %v3094_v33, %v1517_v60  ;;  %v1592_v57 = vmul.f32 %v3044_v7, %v3152_v4  ;;  %v1645_v35 = vmul.f32 %v3166_v13, %v1624_v37 }
 0x20e   : > { %v1607_v23 = vadd.f32 %v1591_v14, %v1554_v15  ;;  %v1485_v24 = vmul.f32 %v3105_v40, %v1623_v27  ;;  %v1555_v11 = vadd.f32 %v1539_v19, %v1500_v62  ;;  %v1341_v9 = vadd.f32 %v1325_v61, %v1288_v8  ;;  %v1520_v61 = vld [vmem:[#allocation2 + $0xc7] sm:$0xff] }
 0x20f   : > { %v1448_v25 = vadd.f32 %v1432_v53, %v1395_v55  ;;  %v1220_v58 = vmul.f32 %v3038_v5, %v1516_v41  ;;  %v1540_v26 = vmul.f32 %v3146_v63, %v1518_v2  ;;  %v1593_v51 = vmul.f32 %v3044_v7, %v3210_v50 }
 0x210   : > { %v1660_v20 = vadd.f32 %v1644_v44, %v1607_v23  ;;  %v1273_v42 = vmul.f32 %v2991_v52, %v3175_v46  ;;  %v1608_v6 = vadd.f32 %v1592_v57, %v1555_v11  ;;  %v1396_v28 = vadd.f32 %v1380_v10, %v1341_v9 }
 0x211   : > { %v1501_v43 = vadd.f32 %v1485_v24, %v1448_v25  ;;  %v1433_v14 = vmul.f32 %v3003_v56, %v3152_v4  ;;  %v1646_v32 = vmul.f32 %v3166_v13, %v1625_v16  ;;  %v1326_v34 = vmul.f32 %v3028_v0, %v1623_v27 }
 0x212   : > { %2290 = vmatprep.mubr.f32.mxu0 %v1660_v20  ;;  %v1289_v41 = vadd.f32 %v1273_v42, %v1220_v58  ;;  %v1381_v1 = vmul.f32 %v3094_v33, %v1518_v2  ;;  %v1661_v36 = vadd.f32 %v1645_v35, %v1608_v6  ;;  %v1486_v46 = vmul.f32 %v3105_v40, %v1624_v37  ;;  %v1627_v35 = vld [vmem:[#allocation2 + $0xc9] sm:$0xff]  ;;  %v1628_v6 = vld [vmem:[#allocation2 + $0xd1] sm:$0xff] }
 0x213   : > { %v1556_v31 = vadd.f32 %v1540_v26, %v1501_v43  ;;  %v1449_v45 = vadd.f32 %v1433_v14, %v1396_v28  ;;  %v1541_v44 = vmul.f32 %v3146_v63, %v1519_v30  ;;  %v1221_v22 = vmul.f32 %v3038_v5, %v1517_v60  ;;  %v1521_v42 = vld [vmem:[#allocation2 + $0xcf] sm:$0xff] }
 0x214   : > { %v1342_v49 = vadd.f32 %v1326_v34, %v1289_v41  ;;  %v1274_v38 = vmul.f32 %v2991_v52, %v3152_v4  ;;  %2291 = vmatmul.mubr.f32.gmra.mrb[24].mxu0 %v1661_v36  ;;  %v1594_v27 = vmul.f32 %v3044_v7, %v3200_v47  ;;  %v1434_v19 = vmul.f32 %v3003_v56, %v3210_v50 }
 0x215   : > { %v1609_v59 = vadd.f32 %v1593_v51, %v1556_v31  ;;  %v1502_v15 = vadd.f32 %v1486_v46, %v1449_v45  ;;  %v1327_v55 = vmul.f32 %v3028_v0, %v1624_v37  ;;  %v1382_v8 = vmul.f32 %v3094_v33, %v1519_v30 }
 0x216   : > { %v1397_v53 = vadd.f32 %v1381_v1, %v1342_v49  ;;  %v1290_v62 = vadd.f32 %v1274_v38, %v1221_v22  ;;  %v1647_v4 = vmul.f32 %v3166_v13, %v1626_v48  ;;  %v1487_v23 = vmul.f32 %v3105_v40, %v1625_v16 }
 0x217   : > { %v1662_v60 = vadd.f32 %v1646_v32, %v1609_v59  ;;  %v1557_v10 = vadd.f32 %v1541_v44, %v1502_v15  ;;  %v1222_v11 = vmul.f32 %v3038_v5, %v1518_v2  ;;  %v1275_v25 = vmul.f32 %v2991_v52, %v3210_v50  ;;  %v1522_v59 = vld [vmem:[#allocation2 + $0xe7] sm:$0xff] }
 0x218   : > { %v1450_v57 = vadd.f32 %v1434_v19, %v1397_v53  ;;  %v1343_v24 = vadd.f32 %v1327_v55, %v1290_v62  ;;  %v1542_v37 = vmul.f32 %v3146_v63, %v1520_v61  ;;  %v1435_v58 = vmul.f32 %v3003_v56, %v3200_v47  ;;  %v1629_v15 = vld [vmem:[#allocation2 + $0xe9] sm:$0xff] }
 0x219   : > { %2293 = vmatprep.mubr.f32.mxu0 %v1662_v60  ;;  %v1610_v9 = vadd.f32 %v1594_v27, %v1557_v10  ;;  %v1328_v20 = vmul.f32 %v3028_v0, %v1625_v16  ;;  %v1291_v43 = vadd.f32 %v1275_v25, %v1222_v11  ;;  %v1383_v28 = vmul.f32 %v3094_v33, %v1520_v61  ;;  %v1523_v25 = vld [vmem:[#allocation2 + $0xef] sm:$0xff] }
 0x21a   : > { %v1503_v26 = vadd.f32 %v1487_v23, %v1450_v57  ;;  %v1398_v51 = vadd.f32 %v1382_v8, %v1343_v24  ;;  %v1595_v50 = vmul.f32 %v3044_v7, %v3246_v39  ;;  %v1648_v14 = vmul.f32 %v3166_v13, %v1627_v35 }
 0x21b   : > { %v1663_v2 = vadd.f32 %v1647_v4, %v1610_v9  ;;  %v1488_v32 = vmul.f32 %v3105_v40, %v1626_v48  ;;  %v1344_v1 = vadd.f32 %v1328_v20, %v1291_v43  ;;  %v1223_v16 = vmul.f32 %v3038_v5, %v1519_v30 }
 0x21c   : > { %v1558_v41 = vadd.f32 %v1542_v37, %v1503_v26  ;;  %v1451_v34 = vadd.f32 %v1435_v58, %v1398_v51  ;;  %v1543_v36 = vmul.f32 %v3146_v63, %v1521_v42  ;;  %v1596_v31 = vmul.f32 %v3044_v7, %v3237_v17 }
 0x21d   : > { %2294 = vmatmul.mubr.f32.gmra.mrb[26].mxu0 %v1663_v2  ;;  %v1649_v45 = vmul.f32 %v3166_v13, %v1628_v6  ;;  %v1276_v46 = vmul.f32 %v2991_v52, %v3200_v47  ;;  %v1399_v22 = vadd.f32 %v1383_v28, %v1344_v1  ;;  %v1436_v38 = vmul.f32 %v3003_v56, %v3246_v39  ;;  %v1630_v2 = vld [vmem:[#allocation2 + $0xf1] sm:$0xff] }
 0x21e   : > { %v1611_v44 = vadd.f32 %v1595_v50, %v1558_v41  ;;  %v1504_v49 = vadd.f32 %v1488_v32, %v1451_v34  ;;  %v1489_v30 = vmul.f32 %v3105_v40, %v1627_v35  ;;  %v1329_v19 = vmul.f32 %v3028_v0, %v1626_v48 }
 0x21f   : > { %v1292_v27 = vadd.f32 %v1276_v46, %v1223_v16  ;;  %v1384_v53 = vmul.f32 %v3094_v33, %v1521_v42  ;;  %v1452_v8 = vadd.f32 %v1436_v38, %v1399_v22  ;;  %v1224_v47 = vmul.f32 %v3038_v5, %v1520_v61  ;;  %v1524_v16 = vld [vmem:[#allocation2 + $0x107] sm:$0xff] }
 0x220   : > { %v1664_v62 = vadd.f32 %v1648_v14, %v1611_v44  ;;  %v1559_v55 = vadd.f32 %v1543_v36, %v1504_v49  ;;  %v1544_v60 = vmul.f32 %v3146_v63, %v1522_v59  ;;  %v1597_v10 = vmul.f32 %v3044_v7, %v3282_v29 }
 0x221   : > { %v1345_v4 = vadd.f32 %v1329_v19, %v1292_v27  ;;  %v1277_v23 = vmul.f32 %v2991_v52, %v3246_v39  ;;  %v1505_v24 = vadd.f32 %v1489_v30, %v1452_v8  ;;  %v1650_v48 = vmul.f32 %v3166_v13, %v1629_v15  ;;  %v1631_v8 = vld [vmem:[#allocation2 + $0x109] sm:$0xff] }
 0x222   : > { %2296 = vmatprep.mubr.f32.mxu0 %v1664_v62  ;;  %v1612_v57 = vadd.f32 %v1596_v31, %v1559_v55  ;;  %v1437_v11 = vmul.f32 %v3003_v56, %v3237_v17  ;;  %v1330_v37 = vmul.f32 %v3028_v0, %v1627_v35  ;;  %v1385_v58 = vmul.f32 %v3094_v33, %v1522_v59 }
 0x223   : > { %v1400_v9 = vadd.f32 %v1384_v53, %v1345_v4  ;;  %v1293_v61 = vadd.f32 %v1277_v23, %v1224_v47  ;;  %v1560_v26 = vadd.f32 %v1544_v60, %v1505_v24  ;;  %v1490_v51 = vmul.f32 %v3105_v40, %v1628_v6  ;;  %v1525_v47 = vld [vmem:[#allocation2 + $0x10f] sm:$0xff] }
 0x224   : > { %v1665_v20 = vadd.f32 %v1649_v45, %v1612_v57  ;;  %v1225_v39 = vmul.f32 %v3038_v5, %v1521_v42  ;;  %v1545_v28 = vmul.f32 %v3146_v63, %v1523_v25  ;;  %v1278_v14 = vmul.f32 %v2991_v52, %v3237_v17 }
 0x225   : > { %v1453_v43 = vadd.f32 %v1437_v11, %v1400_v9  ;;  %v1346_v50 = vadd.f32 %v1330_v37, %v1293_v61  ;;  %v1613_v32 = vadd.f32 %v1597_v10, %v1560_v26  ;;  %v1598_v35 = vmul.f32 %v3044_v7, %v3271_v54  ;;  %v1526_v26 = vld [vmem:[#allocation2 + $0x127] sm:$0xff] }
 0x226   : > { %2297 = vmatmul.mubr.f32.gmra.mrb[28].mxu0 %v1665_v20  ;;  %v1438_v41 = vmul.f32 %v3003_v56, %v3282_v29  ;;  %v1331_v34 = vmul.f32 %v3028_v0, %v1628_v6  ;;  %v1294_v36 = vadd.f32 %v1278_v14, %v1225_v39  ;;  %v1386_v31 = vmul.f32 %v3094_v33, %v1523_v25 }
 0x227   : > { %v1506_v1 = vadd.f32 %v1490_v51, %v1453_v43  ;;  %v1401_v42 = vadd.f32 %v1385_v58, %v1346_v50  ;;  %v1666_v45 = vadd.f32 %v1650_v48, %v1613_v32  ;;  %v1651_v46 = vmul.f32 %v3166_v13, %v1630_v2 }
 0x228   : > { %v1491_v17 = vmul.f32 %v3105_v40, %v1629_v15  ;;  %v1226_v44 = vmul.f32 %v3038_v5, %v1522_v59  ;;  %v1347_v38 = vadd.f32 %v1331_v34, %v1294_v36  ;;  %v1279_v30 = vmul.f32 %v2991_v52, %v3282_v29  ;;  %v1633_v34 = vld [vmem:[#allocation2 + $0x129] sm:$0xff] }
 0x229   : > { %v1561_v49 = vadd.f32 %v1545_v28, %v1506_v1  ;;  %v1454_v22 = vadd.f32 %v1438_v41, %v1401_v42  ;;  %2299 = vmatprep.mubr.f32.mxu1 %v1666_v45  ;;  %v1546_v6 = vmul.f32 %v3146_v63, %v1524_v16  ;;  %v1439_v27 = vmul.f32 %v3003_v56, %v3271_v54 }
 0x22a   : > { %v1332_v19 = vmul.f32 %v3028_v0, %v1629_v15  ;;  %v1387_v53 = vmul.f32 %v3094_v33, %v1524_v16  ;;  %v1402_v59 = vadd.f32 %v1386_v31, %v1347_v38  ;;  %v1295_v60 = vadd.f32 %v1279_v30, %v1226_v44  ;;  %v1527_v16 = vld [vmem:[#allocation2 + $0x12f] sm:$0xff] }
 0x22b   : > { %v1614_v62 = vadd.f32 %v1598_v35, %v1561_v49  ;;  %v1507_v55 = vadd.f32 %v1491_v17, %v1454_v22  ;;  %v1599_v10 = vmul.f32 %v3044_v7, %v3319_v18  ;;  %v1492_v29 = vmul.f32 %v3105_v40, %v1630_v2 }
 0x22c   : > { %v1227_v4 = vmul.f32 %v3038_v5, %v1523_v25  ;;  %v1455_v24 = vadd.f32 %v1439_v27, %v1402_v59  ;;  %v1348_v48 = vadd.f32 %v1332_v19, %v1295_v60  ;;  %v1652_v15 = vmul.f32 %v3166_v13, %v1631_v8  ;;  %v1632_v25 = vld [vmem:[#allocation2 + $0x111] sm:$0xff] }
 0x22d   : > { %v1667_v23 = vadd.f32 %v1651_v46, %v1614_v62  ;;  %v1562_v57 = vadd.f32 %v1546_v6, %v1507_v55  ;;  %v1547_v11 = vmul.f32 %v3146_v63, %v1525_v47  ;;  %v1280_v9 = vmul.f32 %v2991_v52, %v3271_v54 }
 0x22e   : > { %v1508_v37 = vadd.f32 %v1492_v29, %v1455_v24  ;;  %v1403_v58 = vadd.f32 %v1387_v53, %v1348_v48  ;;  %v1440_v20 = vmul.f32 %v3003_v56, %v3319_v18  ;;  %v1600_v5 = vmul.f32 %v3044_v7, %v3310_v3 }
 0x22f   : > { %2300 = vmatmul.mubr.f32.vlgmr.msra.gmra.mrb[20].mxu1 %v1667_v23  ;;  %v1615_v61 = vadd.f32 %v1599_v10, %v1562_v57  ;;  %v1296_v51 = vadd.f32 %v1280_v9, %v1227_v4  ;;  %v1333_v39 = vmul.f32 %v3028_v0, %v1630_v2  ;;  %v1388_v43 = vmul.f32 %v3094_v33, %v1525_v47 }
 0x230   : > { %v1563_v50 = vadd.f32 %v1547_v11, %v1508_v37  ;;  %v1456_v52 = vadd.f32 %v1440_v20, %v1403_v58  ;;  %v1493_v54 = vmul.f32 %v3105_v40, %v1631_v8  ;;  %v1653_v18 = vmul.f32 %v3166_v13, %v1632_v25 }
 0x231   : > { %v1668_v28 = vadd.f32 %v1652_v15, %v1615_v61  ;;  %v1349_v14 = vadd.f32 %v1333_v39, %v1296_v51  ;;  %v1548_v41 = vmul.f32 %v3146_v63, %v1526_v26  ;;  %v1441_v0 = vmul.f32 %v3003_v56, %v3310_v3  ;;  %v1634_v56 = vld [vmem:[#allocation2 + $0x131] sm:$0xff] }
 0x232   : > { %v1616_v32 = vadd.f32 %v1600_v5, %v1563_v50  ;;  %v1509_v35 = vadd.f32 %v1493_v54, %v1456_v52  ;;  %v1601_v42 = vmul.f32 %v3044_v7, %v3348_v12  ;;  %v1494_v31 = vmul.f32 %v3105_v40, %v1632_v25 }
 0x233   : > { %2302 = vmatprep.mubr.f32.mxu1 %v1668_v28  ;;  %v1404_v1 = vadd.f32 %v1388_v43, %v1349_v14  ;;  %v1654_v46 = vmul.f32 %v3166_v13, %v1633_v34  ;;  %v1549_v44 = vmul.f32 %v3146_v63, %v1527_v16  ;;  %v1602_v22 = vmul.f32 %v3044_v7, %v3341_v21 }
 0x234   : > { %v1669_v2 = vadd.f32 %v1653_v18, %v1616_v32  ;;  %v1564_v33 = vadd.f32 %v1548_v41, %v1509_v35  ;;  %v1655_v38 = vmul.f32 %v3166_v13, %v1634_v56 }
 0x235   : > { %v1457_v36 = vadd.f32 %v1441_v0, %v1404_v1 }
 0x236   : > { %2303 = vmatmul.mubr.f32.gmra.mrb[22].mxu1 %v1669_v2  ;;  %v1617_v45 = vadd.f32 %v1601_v42, %v1564_v33 }
 0x237   : > { %v1510_v17 = vadd.f32 %v1494_v31, %v1457_v36 }
 0x238   : > { %v1670_v49 = vadd.f32 %v1654_v46, %v1617_v45 }
 0x239   : > { %v1565_v3 = vadd.f32 %v1549_v44, %v1510_v17 }
 0x23a   : > { %2305 = vmatprep.mubr.f32.mxu1 %v1670_v49 }
 0x23b   : > { %v1618_v12 = vadd.f32 %v1602_v22, %v1565_v3 }
 0x23d   : > { %v1671_v30 = vadd.f32 %v1655_v38, %v1618_v12 }
 0x23f   : > { %2306 = vmatmul.mubr.f32.gmra.mrb[24].mxu1 %v1671_v30 }
 0x2ce   : > { %v2286_v40 = vpop.f32.mrb[20].mxu0 }
 0x2cf   : > { %1835 = vst.msk [vmem:[%s3508_s28 + $0x8] sm:$0xff] %vm1833_vm3, %v2286_v40  ;;  %v1754_v7 = vpop.f32.mrb[21].mxu0 }
 0x2d0   : > { %1834 = vst.msk [vmem:[%s3508_s28] sm:$0xff] %vm1833_vm3, %v1754_v7 }
 0x2e0   : > { %v2289_v63 = vpop.f32.mrb[22].mxu0 }
 0x2e1   : > { %1837 = vst.msk [vmem:[%s3508_s28 + $0x18] sm:$0xff] %vm1833_vm3, %v2289_v63  ;;  %v1764_v13 = vpop.f32.mrb[23].mxu0 }
 0x2e2   : > { %1836 = vst.msk [vmem:[%s3508_s28 + $0x10] sm:$0xff] %vm1833_vm3, %v1764_v13 }
 0x2e7   : > { %v2292_v21 = vpop.f32.mrb[24].mxu0 }
 0x2e8   : > { %1839 = vst.msk [vmem:[%s3508_s28 + $0x28] sm:$0xff] %vm1833_vm3, %v2292_v21  ;;  %v1774_v6 = vpop.f32.mrb[25].mxu0 }
 0x2e9   : > { %1838 = vst.msk [vmem:[%s3508_s28 + $0x20] sm:$0xff] %vm1833_vm3, %v1774_v6 }
 0x2f0   : > { %v2295_v27 = vpop.f32.mrb[26].mxu0 }
 0x2f1   : > { %1841 = vst.msk [vmem:[%s3508_s28 + $0x38] sm:$0xff] %vm1833_vm3, %v2295_v27  ;;  %v1784_v19 = vpop.f32.mrb[27].mxu0 }
 0x2f2   : > { %1840 = vst.msk [vmem:[%s3508_s28 + $0x30] sm:$0xff] %vm1833_vm3, %v1784_v19 }
 0x2f9   : > { %v2298_v53 = vpop.f32.mrb[28].mxu0 }
 0x2fa   : > { %1843 = vst.msk [vmem:[%s3508_s28 + $0x48] sm:$0xff] %vm1833_vm3, %v2298_v53  ;;  %v1794_v62 = vpop.f32.mrb[29].mxu0 }
 0x2fb   : > { %1842 = vst.msk [vmem:[%s3508_s28 + $0x40] sm:$0xff] %vm1833_vm3, %v1794_v62 }
 0x302   : > { %v2301_v55 = vpop.f32.mrb[20].mxu1 }
 0x303   : > { %1845 = vst.msk [vmem:[%s3508_s28 + $0x58] sm:$0xff] %vm1833_vm3, %v2301_v55  ;;  %v1804_v8 = vpop.f32.mrb[21].mxu1 }
 0x304   : > { %1844 = vst.msk [vmem:[%s3508_s28 + $0x50] sm:$0xff] %vm1833_vm3, %v1804_v8 }
 0x309   : > { %v2304_v59 = vpop.f32.mrb[22].mxu1 }
 0x30a   : > { %1847 = vst.msk [vmem:[%s3508_s28 + $0x68] sm:$0xff] %vm1833_vm3, %v2304_v59  ;;  %v1814_v47 = vpop.f32.mrb[23].mxu1 }
 0x30b   : > { %1846 = vst.msk [vmem:[%s3508_s28 + $0x60] sm:$0xff] %vm1833_vm3, %v1814_v47 }
 0x312   : > { %v2307_v60 = vpop.f32.mrb[24].mxu1 }
 0x313   : > { %1849 = vst.msk [vmem:[%s3508_s28 + $0x78] sm:$0xff] %vm1833_vm3, %v2307_v60  ;;  %v1824_v10 = vpop.f32.mrb[25].mxu1 }
 0x314   : > { %1848 = vst.msk [vmem:[%s3508_s28 + $0x70] sm:$0xff] %vm1833_vm3, %v1824_v10 }
 0x315   : > { %2471 = shalt.err (!%p2468_p7)
}
 0x316   : > { %s2472_s21 = scalar_lea.hbm %s3544_s1, 2048  ;;  %s2476_s12 = scalar_lea.hbm %s3616_s10, 8192 }
 0x317   : > { %p2473_p9 = scmp.ne.s32.totalorder %s3544_s1, %s2472_s21  ;;  %p2477_p12 = scmp.lt.u32.totalorder %s3544_s1, %s3616_s10 }
 0x318   : > { %p2478_p13 = scmp.lt.u32.totalorder %s2476_s12, %s2472_s21  ;;  %p2480_p1 = scmp.lt.u32.totalorder %s2472_s21, %s3544_s1 }
 0x319   : > { %p2474_p10 = pnand %p2473_p9, %p2665_p3 }
 0x31a   : > { %p2479_p0 = por %p2478_p13, %p2477_p12 }
 0x31b   : > { %p2475_p11 = pneg %p2474_p10 }
 0x31c   : > { %p2481_p2 = por %p2480_p1, %p2479_p0 }
 0x31e   : > { %p2482_p4 = pnand %p2481_p2, %p2475_p11 }
 0x320   : > { %2485 = shalt.err (!%p2482_p4)
}
 0x321   : > { %s2557_s0 = smov 128   ;;  %s2558_s17 = smov 8  }
 0x322   : > { %2383 = dma.vmem_to_hbm [thread:$0]  (%p2665_p3), %s3546_s18, 2048, %s3544_s1, %s3554_s16, %s2557_s0, %s2557_s0, %s2558_s17  }
 0x323 PF: > { %p2389_p5 = scmp.ge.s32.totalorder %s2552_s20, 2  ;;  %s1909_s25 = sand.u32 1, %s2524_s13  }
 0x324   : > { %s1910_s29 = scalar_lea.sflag [#allocation4], %s1909_s25 }
 0x325   : > { %p2386_p6 = pnand %p2389_p5, %p2674_p8 }
 0x327   : > { %2519 = dma.done.wait (!%p2386_p6), %s1910_s29, 2048  }
 0x328   : > { %2521 = vsyncadd (!%p2386_p6), %s1910_s29, 4294965248  ;;  %s24_s20 = sadd.s32 1, %s2552_s20   ;;  %s3652_s16 = sld [smem:[#allocation6_spill]] }
 0x329   : > { %p21_p7 = scmp.ge.s32.totalorder %s24_s20, 6   ;;  %s3653_s18 = sld [smem:[#allocation7_spill]] }
 0x32a   : > { %s3654_s13 = smov %s2528_s14  ;;  %s3655_s14 = smov %s2532_s15 }
 0x32b   : > { %s3656_s15 = smov %s2683_s11  ;;  %s3657_s17 = smov %s2548_s19 }
 0x32c   : > { %s3658_s19 = smov %s3664_s24  ;;  %23 = sbr.rel (!%p21_p7) target bundleno = 8 (0x8), region = 108 }
 0x333   :  { %1915 = vsyncpa [#allocation4], 1 }
 0x334   :  { %1917 = vsyncpa [#allocation4 + $0x1], 1 }

</bundles_post_ra>
